<compile_context>
chip_gen: v7x
topology: tpu7x:2x2x1
jax: 0.10.0
libtpu: 0.0.40
codegen_flags: <defaults>
</compile_context>

<pallas_src>
import functools

import jax
import jax.numpy as jnp
from jax import lax
from jax.experimental import pallas as pl
from jax.experimental.pallas import tpu as pltpu


# ----------------------------- Pallas kernel --------------------------------

def _layernorm(x, g, b, eps=1e-5):
    mu = jnp.mean(x, axis=-1, keepdims=True)
    var = jnp.mean((x - mu) ** 2, axis=-1, keepdims=True)
    return (x - mu) * lax.rsqrt(var + eps) * g + b


def _encoder_kernel(heads, head_dim, nb,
                    x_ref, bias_ref,
                    wq_ref, bq_ref, wk_ref, bk_ref, wv_ref, bv_ref,
                    wo_ref, bo_ref, g1_ref, be1_ref,
                    w1_ref, bf1_ref, w2_ref, bf2_ref, g2_ref, be2_ref,
                    o_ref):
    T = x_ref.shape[1]
    E = x_ref.shape[2]
    layer = pl.program_id(1)

    # Layer 0: seed the VMEM-resident activations from the embedded input.
    @pl.when(layer == 0)
    def _():
        o_ref[...] = x_ref[...]

    x3 = o_ref[...]                           # (NB, T, E) f32, resident across layers
    x2 = x3.reshape(nb * T, E)                # flatten batch block into rows
    xb = x2.astype(jnp.bfloat16)

    # q/k/v projections: the shared per-head (D,D) Linears are folded into one
    # block-diagonal (E,E) bf16 matmul (MXU-friendly for head_dim < 128; for
    # head_dim >= 128 a dense (rows*heads, D) @ (D, D) form would avoid the
    # heads-x FLOP inflation -- review note #6).
    q = jnp.dot(xb, wq_ref[0], preferred_element_type=jnp.float32) + bq_ref[0]
    k = jnp.dot(xb, wk_ref[0], preferred_element_type=jnp.float32) + bk_ref[0]
    v = jnp.dot(xb, wv_ref[0], preferred_element_type=jnp.float32) + bv_ref[0]

    # Fold the 1/sqrt(embed_size) scale into q (T*E mults instead of T*T per head).
    # NOTE: embed_size (not head_dim) is intentional -- it matches the PyTorch module.
    q3 = (q * (1.0 / (float(E) ** 0.5))).reshape(nb, T, E)
    k3 = k.reshape(nb, T, E)
    v3 = v.reshape(nb, T, E)
    bias = bias_ref[...]                      # (NB, 1, T) additive key mask (0 / -1e20)

    if head_dim % 128 == 0:
        # Lane-tile-aligned head_dim: single contraction batched over
        # (batch, head) -- no per-head slicing / concatenation (review note #1).
        q4 = q3.astype(jnp.bfloat16).reshape(nb, T, heads, head_dim)
        k4 = k3.astype(jnp.bfloat16).reshape(nb, T, heads, head_dim)
        v4 = v3.astype(jnp.bfloat16).reshape(nb, T, heads, head_dim)
        e = lax.dot_general(q4, k4, (((3,), (3,)), ((0, 2), (0, 2))),
                            preferred_element_type=jnp.float32)        # (NB,H,T,T)
        e = e + bias[:, :, None, :]
        m = jnp.max(e, axis=-1, keepdims=True)
        p = jnp.exp(e - m)
        attn = p * pl.reciprocal(jnp.sum(p, axis=-1, keepdims=True), approx=True)
        ctx4 = lax.dot_general(attn.astype(jnp.bfloat16), v4,
                               (((3,), (1,)), ((0, 1), (0, 2))),
                               preferred_element_type=jnp.float32)     # (NB,H,T,D)
        ctx = jnp.transpose(ctx4, (0, 2, 1, 3)).reshape(nb * T, E)
    else:
        # head_dim < 128: per-head lane slices, matmuls batched over the batch
        # block on the MXU with f32 accumulation.
        head_outs = []
        for h in range(heads):
            lo = h * head_dim
            qh = q3[:, :, lo:lo + head_dim].astype(jnp.bfloat16)
            kh = k3[:, :, lo:lo + head_dim].astype(jnp.bfloat16)
            vh = v3[:, :, lo:lo + head_dim].astype(jnp.bfloat16)
            e = lax.dot_general(qh, kh, (((2,), (2,)), ((0,), (0,))),
                                preferred_element_type=jnp.float32)    # (NB, T, T)
            e = e + bias
            m = jnp.max(e, axis=-1, keepdims=True)
            p = jnp.exp(e - m)
            attn = p * pl.reciprocal(jnp.sum(p, axis=-1, keepdims=True), approx=True)
            head_outs.append(
                lax.dot_general(attn.astype(jnp.bfloat16), vh,
                                (((2,), (1,)), ((0,), (0,))),
                                preferred_element_type=jnp.float32))   # (NB, T, D)
        ctx = jnp.concatenate(head_outs, axis=-1).reshape(nb * T, E)

    attn_out = jnp.dot(ctx.astype(jnp.bfloat16), wo_ref[0],
                       preferred_element_type=jnp.float32) + bo_ref[0]
    # TODO(synk): nn.Dropout layers are identity here (inference / eval mode).
    x1 = _layernorm(x2 + attn_out, g1_ref[0], be1_ref[0])

    ff = jnp.dot(x1.astype(jnp.bfloat16), w1_ref[0],
                 preferred_element_type=jnp.float32) + bf1_ref[0]
    ff = jnp.maximum(ff, 0.0)
    ff = jnp.dot(ff.astype(jnp.bfloat16), w2_ref[0],
                 preferred_element_type=jnp.float32) + bf2_ref[0]
    out = _layernorm(x1 + ff, g2_ref[0], be2_ref[0])

    o_ref[...] = out.reshape(nb, T, E)


# ------------------------------ wrapper --------------------------------------

_WKEYS = ("wqT", "bq", "wkT", "bk", "wvT", "bv", "woT", "bo",
          "g1", "be1", "w1T", "bf1", "w2T", "bf2", "g2", "be2")


def encoder_stack(x, mask_bias, kern, heads, *, batch_block=1,
                  vmem_limit_bytes=32 * 1024 * 1024):
    N, T, E = x.shape
    L = kern["wqT"].shape[0]
    nb = batch_block
    assert N % nb == 0, "batch must be divisible by batch_block"
    assert E % heads == 0
    head_dim = E // heads
    weights = [kern[k] for k in _WKEYS]

    # Per-layer weight blocks: index map varies along the layer grid axis, so
    # default double-buffering overlaps layer l+1's weight DMA with layer l's
    # compute (review note on cross-layer weight prefetch).
    def w_spec(arr):
        return pl.BlockSpec((1,) + arr.shape[1:], lambda n, l: (l, 0, 0))

    in_specs = [
        pl.BlockSpec((nb, T, E), lambda n, l: (n, 0, 0)),   # embedded input
        pl.BlockSpec((nb, 1, T), lambda n, l: (n, 0, 0)),   # additive key-mask bias
    ] + [w_spec(w) for w in weights]

    kernel = functools.partial(_encoder_kernel, heads, head_dim, nb)
    return pl.pallas_call(
        kernel,
        out_shape=jax.ShapeDtypeStruct((N, T, E), jnp.float32),
        grid=(N // nb, L),
        in_specs=in_specs,
        # Output block index constant along the layer axis -> activations stay
        # resident in VMEM for the whole stack; written back once per batch tile.
        out_specs=pl.BlockSpec((nb, T, E), lambda n, l: (n, 0, 0)),
        compiler_params=pltpu.CompilerParams(
            dimension_semantics=("parallel", "arbitrary"),
            vmem_limit_bytes=vmem_limit_bytes,
        ),
    )(x, mask_bias, *weights)


def encoder_forward(token_ids, mask, params, heads, *, batch_block=1):
    word_emb, pos_emb, kern, _ = params
    N, T = token_ids.shape
    E = word_emb.shape[1]
    scale = float(E) ** 0.5
    # Embedding gather stays in plain JAX (memory gather, not the compute path).
    x = (jnp.take(word_emb, token_ids, axis=0) + pos_emb[:T][None, :, :]) * scale
    # TODO(synk): nn.Dropout after the embedding is identity (eval mode).
    # Hoist the mask compare out of the kernel: additive key bias (0 / -1e20).
    mask_bias = jnp.where(mask == 0, -1e20, 0.0).astype(jnp.float32)    # (N, 1, T)
    return encoder_stack(x, mask_bias, kern, heads, batch_block=batch_block)


# ------------------------- deterministic parameter init ----------------------

def init_params(key, vocab, max_len, E, heads, n_layers, expansion):
    D = E // heads
    F = E * expansion
    keys = jax.random.split(key, 2 + n_layers)
    word_emb = jax.random.normal(keys[0], (vocab, E), jnp.float32)
    pos_emb = jax.random.normal(keys[1], (max_len, E), jnp.float32)

    def lin(k, out_f, in_f):
        bound = 1.0 / (in_f ** 0.5)
        k1, k2 = jax.random.split(k)
        W = jax.random.uniform(k1, (out_f, in_f), jnp.float32, -bound, bound)
        b = jax.random.uniform(k2, (out_f,), jnp.float32, -bound, bound)
        return W, b

    eye = jnp.eye(heads, dtype=jnp.float32)
    raw_layers, kern_layers = [], []
    for i in range(n_layers):
        lk = jax.random.split(keys[2 + i], 6)
        Wq, bq = lin(lk[0], D, D)
        Wk, bk = lin(lk[1], D, D)
        Wv, bv = lin(lk[2], D, D)
        Wo, bo = lin(lk[3], E, E)
        W1, b1 = lin(lk[4], F, E)
        W2, b2 = lin(lk[5], E, F)
        g1 = jnp.ones((E,), jnp.float32); be1 = jnp.zeros((E,), jnp.float32)
        g2 = jnp.ones((E,), jnp.float32); be2 = jnp.zeros((E,), jnp.float32)

        raw_layers.append(dict(Wq=Wq, bq=bq, Wk=Wk, bk=bk, Wv=Wv, bv=bv,
                               Wo=Wo, bo=bo, W1=W1, b1=b1, W2=W2, b2=b2,
                               g1=g1, be1=be1, g2=g2, be2=be2))
        # Kernel-layout weights: block-diagonal q/k/v (shared per-head Linear),
        # transposed for row-major x @ W, matmul weights in bf16.
        kern_layers.append(dict(
            wqT=jnp.kron(eye, Wq).T.astype(jnp.bfloat16), bq=jnp.tile(bq, heads)[None, :],
            wkT=jnp.kron(eye, Wk).T.astype(jnp.bfloat16), bk=jnp.tile(bk, heads)[None, :],
            wvT=jnp.kron(eye, Wv).T.astype(jnp.bfloat16), bv=jnp.tile(bv, heads)[None, :],
            woT=Wo.T.astype(jnp.bfloat16), bo=bo[None, :],
            g1=g1[None, :], be1=be1[None, :],
            w1T=W1.T.astype(jnp.bfloat16), bf1=b1[None, :],
            w2T=W2.T.astype(jnp.bfloat16), bf2=b2[None, :],
            g2=g2[None, :], be2=be2[None, :]))
    # Stack per-layer weights along a leading axis == the layer grid axis.
    kern = {k: jnp.stack([kl[k] for kl in kern_layers], axis=0)
            for k in kern_layers[0]}
    return word_emb, pos_emb, kern, raw_layers


# ------------------------- pure-JAX reference (checking) ---------------------
# Same numerics as the kernel (bf16 matmul operands, f32 accumulation);
# semantics follow the PyTorch Encoder forward.

def _ref_ln(x, g, b, eps=1e-5):
    mu = jnp.mean(x, axis=-1, keepdims=True)
    var = jnp.mean((x - mu) ** 2, axis=-1, keepdims=True)
    return (x - mu) * lax.rsqrt(var + eps) * g + b


def _bf16_einsum(subs, a, b):
    return jnp.einsum(subs, a.astype(jnp.bfloat16), b.astype(jnp.bfloat16),
                      preferred_element_type=jnp.float32)


def ref_encoder(token_ids, mask, params, heads):
    word_emb, pos_emb, _, raw_layers = params
    N, T = token_ids.shape
    E = word_emb.shape[1]
    D = E // heads
    scale = float(E) ** 0.5
    out = (jnp.take(word_emb, token_ids, axis=0) + pos_emb[:T][None, :, :]) * scale
    m4 = mask[:, :, None, :]                                  # (N, 1, 1, T)
    for r in raw_layers:
        xh = out.reshape(N, T, heads, D)
        q = _bf16_einsum('nthd,od->ntho', xh, r["Wq"]) + r["bq"]
        k = _bf16_einsum('nthd,od->ntho', xh, r["Wk"]) + r["bk"]
        v = _bf16_einsum('nthd,od->ntho', xh, r["Wv"]) + r["bv"]
        q = q / scale                       # == energy / sqrt(embed_size)
        energy = _bf16_einsum('nqhd,nkhd->nhqk', q, k)
        energy = jnp.where(m4 == 0, -1e20, energy)
        attn = jax.nn.softmax(energy, axis=3)
        ctx = _bf16_einsum('nhqk,nkhd->nqhd', attn, v).reshape(N, T, E)
        a_out = _bf16_einsum('nte,oe->nto', ctx, r["Wo"]) + r["bo"]
        x1 = _ref_ln(out + a_out, r["g1"], r["be1"])
        ff = jnp.maximum(_bf16_einsum('nte,fe->ntf', x1, r["W1"]) + r["b1"], 0.0)
        ff = _bf16_einsum('ntf,ef->nte', ff, r["W2"]) + r["b2"]
        out = _ref_ln(x1 + ff, r["g2"], r["be2"])
    return out


# ----------------------------------- main ------------------------------------

if __name__ == "__main__":
    N, T = 2, 8
    E, HEADS = 128, 8          # head_dim = 16 ; E lane-dense (multiple of 128)
    N_LAYERS = 2
    EXPANSION = 4
    VOCAB, MAX_LEN = 50, 16

    key = jax.random.PRNGKey(0)
    k_par, k_tok = jax.random.split(key)
    params = init_params(k_par, VOCAB, MAX_LEN, E, HEADS, N_LAYERS, EXPANSION)

    token_ids = jax.random.randint(k_tok, (N, T), 0, VOCAB, dtype=jnp.int32)
    # key-padding mask: batch 1 has its last two key positions masked out
    mask = jnp.ones((N, 1, T), jnp.int32).at[1, 0, T - 2:].set(0)

    # batch_block=1 -> 2 independent "parallel" batch tiles (keeps both v7x TCs busy
    # at N=2); raise batch_block for larger N.
    out = jax.block_until_ready(
        encoder_forward(token_ids, mask, params, HEADS, batch_block=1))
    assert out.shape == (N, T, E)
    assert bool(jnp.all(jnp.isfinite(out)))

    ref = ref_encoder(token_ids, mask, params, HEADS)
    max_err = float(jnp.max(jnp.abs(out - ref)))
    assert max_err < 2e-2, f"mismatch vs reference: {max_err}"

    print("KERNEL_OK")
</pallas_src>

<mosaic_0001>
module attributes {stable_mosaic.version = 11 : i64} {
  func.func @_encoder_kernel(%arg0: i32, %arg1: i32, %arg2: memref<1x8x128xf32, #tpu.memory_space<vmem>>, %arg3: memref<1x1x8xf32, #tpu.memory_space<vmem>>, %arg4: memref<1x128x128xbf16, #tpu.memory_space<vmem>>, %arg5: memref<1x1x128xf32, #tpu.memory_space<vmem>>, %arg6: memref<1x128x128xbf16, #tpu.memory_space<vmem>>, %arg7: memref<1x1x128xf32, #tpu.memory_space<vmem>>, %arg8: memref<1x128x128xbf16, #tpu.memory_space<vmem>>, %arg9: memref<1x1x128xf32, #tpu.memory_space<vmem>>, %arg10: memref<1x128x128xbf16, #tpu.memory_space<vmem>>, %arg11: memref<1x1x128xf32, #tpu.memory_space<vmem>>, %arg12: memref<1x1x128xf32, #tpu.memory_space<vmem>>, %arg13: memref<1x1x128xf32, #tpu.memory_space<vmem>>, %arg14: memref<1x128x512xbf16, #tpu.memory_space<vmem>>, %arg15: memref<1x1x512xf32, #tpu.memory_space<vmem>>, %arg16: memref<1x512x128xbf16, #tpu.memory_space<vmem>>, %arg17: memref<1x1x128xf32, #tpu.memory_space<vmem>>, %arg18: memref<1x1x128xf32, #tpu.memory_space<vmem>>, %arg19: memref<1x1x128xf32, #tpu.memory_space<vmem>>, %arg20: memref<1x8x128xf32, #tpu.memory_space<vmem>>) attributes {dimension_semantics = [#tpu.dimension_semantics<parallel>, #tpu.dimension_semantics<arbitrary>], iteration_bounds = array<i64: 2, 2>, scalar_prefetch = 0 : i64, scratch_operands = 0 : i64, tpu.core_type = #tpu.core_type<tc>, window_params = [{transform_indices = @transform_0, window_bounds = array<i64: 1, 8, 128>}, {transform_indices = @transform_1, window_bounds = array<i64: 1, 1, 8>}, {transform_indices = @transform_2, window_bounds = array<i64: 1, 128, 128>}, {transform_indices = @transform_3, window_bounds = array<i64: 1, 1, 128>}, {transform_indices = @transform_4, window_bounds = array<i64: 1, 128, 128>}, {transform_indices = @transform_5, window_bounds = array<i64: 1, 1, 128>}, {transform_indices = @transform_6, window_bounds = array<i64: 1, 128, 128>}, {transform_indices = @transform_7, window_bounds = array<i64: 1, 1, 128>}, {transform_indices = @transform_8, window_bounds = array<i64: 1, 128, 128>}, {transform_indices = @transform_9, window_bounds = array<i64: 1, 1, 128>}, {transform_indices = @transform_10, window_bounds = array<i64: 1, 1, 128>}, {transform_indices = @transform_11, window_bounds = array<i64: 1, 1, 128>}, {transform_indices = @transform_12, window_bounds = array<i64: 1, 128, 512>}, {transform_indices = @transform_13, window_bounds = array<i64: 1, 1, 512>}, {transform_indices = @transform_14, window_bounds = array<i64: 1, 512, 128>}, {transform_indices = @transform_15, window_bounds = array<i64: 1, 1, 128>}, {transform_indices = @transform_16, window_bounds = array<i64: 1, 1, 128>}, {transform_indices = @transform_17, window_bounds = array<i64: 1, 1, 128>}, {transform_indices = @transform_18, window_bounds = array<i64: 1, 8, 128>}]} {
    %c0_i32 = arith.constant 0 : i32
    %0 = arith.cmpi eq, %arg1, %c0_i32 : i32
    %1 = arith.extui %0 : i1 to i32
    %c0_i32_0 = arith.constant 0 : i32
    %2 = arith.cmpi ne, %1, %c0_i32_0 : i32
    scf.if %2 {
      %c0_106 = arith.constant 0 : index
      %c0_107 = arith.constant 0 : index
      %c0_108 = arith.constant 0 : index
      %285 = vector.load %arg2[%c0_106, %c0_107, %c0_108] : memref<1x8x128xf32, #tpu.memory_space<vmem>>, vector<1x8x128xf32>
      %c0_109 = arith.constant 0 : index
      %c0_110 = arith.constant 0 : index
      %c0_111 = arith.constant 0 : index
      %286 = vector.load %arg20[%c0_109, %c0_110, %c0_111] : memref<1x8x128xf32, #tpu.memory_space<vmem>>, vector<1x8x128xf32>
      tpu.vector_store %arg20[%c0_109, %c0_110, %c0_111], %285 {strides = array<i32>} : memref<1x8x128xf32, #tpu.memory_space<vmem>>, vector<1x8x128xf32>,
    } else {
    }
    %c0 = arith.constant 0 : index
    %c0_1 = arith.constant 0 : index
    %c0_2 = arith.constant 0 : index
    %3 = vector.load %arg20[%c0, %c0_1, %c0_2] : memref<1x8x128xf32, #tpu.memory_space<vmem>>, vector<1x8x128xf32>
    %4 = vector.shape_cast %3 : vector<1x8x128xf32> to vector<8x128xf32>
    %5 = arith.truncf %4 : vector<8x128xf32> to vector<8x128xbf16>
    %c0_3 = arith.constant 0 : index
    %c0_4 = arith.constant 0 : index
    %c0_5 = arith.constant 0 : index
    %6 = vector.load %arg4[%c0_3, %c0_4, %c0_5] : memref<1x128x128xbf16, #tpu.memory_space<vmem>>, vector<1x128x128xbf16>
    %7 = vector.shape_cast %6 : vector<1x128x128xbf16> to vector<128x128xbf16>
    %cst = arith.constant dense<0.000000e+00> : vector<8x128xf32>
    %8 = tpu.matmul %5, %7, %cst {dimension_numbers = #tpu.dot_dimension_numbers<[1], [0], [0], [1], [0, 0, 1, 1], [], []>} : vector<8x128xbf16>, vector<128x128xbf16>, vector<8x128xf32> -> vector<8x128xf32>
    %c0_6 = arith.constant 0 : index
    %c0_7 = arith.constant 0 : index
    %c0_8 = arith.constant 0 : index
    %9 = vector.load %arg5[%c0_6, %c0_7, %c0_8] : memref<1x1x128xf32, #tpu.memory_space<vmem>>, vector<1x1x128xf32>
    %10 = vector.shape_cast %9 : vector<1x1x128xf32> to vector<1x128xf32>
    %11 = vector.broadcast %10 : vector<1x128xf32> to vector<8x128xf32>
    %12 = arith.addf %8, %11 : vector<8x128xf32>
    %c0_9 = arith.constant 0 : index
    %c0_10 = arith.constant 0 : index
    %c0_11 = arith.constant 0 : index
    %13 = vector.load %arg6[%c0_9, %c0_10, %c0_11] : memref<1x128x128xbf16, #tpu.memory_space<vmem>>, vector<1x128x128xbf16>
    %14 = vector.shape_cast %13 : vector<1x128x128xbf16> to vector<128x128xbf16>
    %cst_12 = arith.constant dense<0.000000e+00> : vector<8x128xf32>
    %15 = tpu.matmul %5, %14, %cst_12 {dimension_numbers = #tpu.dot_dimension_numbers<[1], [0], [0], [1], [0, 0, 1, 1], [], []>} : vector<8x128xbf16>, vector<128x128xbf16>, vector<8x128xf32> -> vector<8x128xf32>
    %c0_13 = arith.constant 0 : index
    %c0_14 = arith.constant 0 : index
    %c0_15 = arith.constant 0 : index
    %16 = vector.load %arg7[%c0_13, %c0_14, %c0_15] : memref<1x1x128xf32, #tpu.memory_space<vmem>>, vector<1x1x128xf32>
    %17 = vector.shape_cast %16 : vector<1x1x128xf32> to vector<1x128xf32>
    %18 = vector.broadcast %17 : vector<1x128xf32> to vector<8x128xf32>
    %19 = arith.addf %15, %18 : vector<8x128xf32>
    %c0_16 = arith.constant 0 : index
    %c0_17 = arith.constant 0 : index
    %c0_18 = arith.constant 0 : index
    %20 = vector.load %arg8[%c0_16, %c0_17, %c0_18] : memref<1x128x128xbf16, #tpu.memory_space<vmem>>, vector<1x128x128xbf16>
    %21 = vector.shape_cast %20 : vector<1x128x128xbf16> to vector<128x128xbf16>
    %cst_19 = arith.constant dense<0.000000e+00> : vector<8x128xf32>
    %22 = tpu.matmul %5, %21, %cst_19 {dimension_numbers = #tpu.dot_dimension_numbers<[1], [0], [0], [1], [0, 0, 1, 1], [], []>} : vector<8x128xbf16>, vector<128x128xbf16>, vector<8x128xf32> -> vector<8x128xf32>
    %c0_20 = arith.constant 0 : index
    %c0_21 = arith.constant 0 : index
    %c0_22 = arith.constant 0 : index
    %23 = vector.load %arg9[%c0_20, %c0_21, %c0_22] : memref<1x1x128xf32, #tpu.memory_space<vmem>>, vector<1x1x128xf32>
    %24 = vector.shape_cast %23 : vector<1x1x128xf32> to vector<1x128xf32>
    %25 = vector.broadcast %24 : vector<1x128xf32> to vector<8x128xf32>
    %26 = arith.addf %22, %25 : vector<8x128xf32>
    %cst_23 = arith.constant 0.0883883461 : f32
    %27 = vector.broadcast %cst_23 : f32 to vector<8x128xf32>
    %28 = arith.mulf %12, %27 : vector<8x128xf32>
    %29 = vector.shape_cast %28 : vector<8x128xf32> to vector<1x8x128xf32>
    %30 = vector.shape_cast %19 : vector<8x128xf32> to vector<1x8x128xf32>
    %31 = vector.shape_cast %26 : vector<8x128xf32> to vector<1x8x128xf32>
    %c0_24 = arith.constant 0 : index
    %c0_25 = arith.constant 0 : index
    %c0_26 = arith.constant 0 : index
    %32 = vector.load %arg3[%c0_24, %c0_25, %c0_26] : memref<1x1x8xf32, #tpu.memory_space<vmem>>, vector<1x1x8xf32>
    %33 = vector.extract_strided_slice %29 {offsets = [0, 0, 0], sizes = [1, 8, 16], strides = [1, 1, 1]} : vector<1x8x128xf32> to vector<1x8x16xf32>
    %34 = arith.truncf %33 : vector<1x8x16xf32> to vector<1x8x16xbf16>
    %35 = vector.extract_strided_slice %30 {offsets = [0, 0, 0], sizes = [1, 8, 16], strides = [1, 1, 1]} : vector<1x8x128xf32> to vector<1x8x16xf32>
    %36 = arith.truncf %35 : vector<1x8x16xf32> to vector<1x8x16xbf16>
    %37 = vector.extract_strided_slice %31 {offsets = [0, 0, 0], sizes = [1, 8, 16], strides = [1, 1, 1]} : vector<1x8x128xf32> to vector<1x8x16xf32>
    %38 = arith.truncf %37 : vector<1x8x16xf32> to vector<1x8x16xbf16>
    %cst_27 = arith.constant dense<0.000000e+00> : vector<1x8x8xf32>
    %39 = tpu.matmul %34, %36, %cst_27 {dimension_numbers = #tpu.dot_dimension_numbers<[2], [2], [1], [1], [0, 0, 0, 1, 1, 1], [0], [0]>} : vector<1x8x16xbf16>, vector<1x8x16xbf16>, vector<1x8x8xf32> -> vector<1x8x8xf32>
    %40 = vector.broadcast %32 : vector<1x1x8xf32> to vector<1x8x8xf32>
    %41 = arith.addf %39, %40 : vector<1x8x8xf32>
    %cst_28 = arith.constant dense<0xFF800000> : vector<1x8xf32>
    %42 = vector.multi_reduction <maximumf>, %41, %cst_28 [2] : vector<1x8x8xf32> to vector<1x8xf32>
    %43 = vector.shape_cast %42 : vector<1x8xf32> to vector<1x8x1xf32>
    %44 = vector.broadcast %43 : vector<1x8x1xf32> to vector<1x8x8xf32>
    %45 = arith.subf %41, %44 : vector<1x8x8xf32>
    %46 = math.exp %45 : vector<1x8x8xf32>
    %cst_29 = arith.constant dense<0.000000e+00> : vector<1x8xf32>
    %47 = vector.multi_reduction <add>, %46, %cst_29 [2] : vector<1x8x8xf32> to vector<1x8xf32>
    %48 = vector.shape_cast %47 : vector<1x8xf32> to vector<1x8x1xf32>
    %49 = tpu.reciprocal %48 {approx = true} : vector<1x8x1xf32> -> vector<1x8x1xf32>
    %50 = vector.broadcast %49 : vector<1x8x1xf32> to vector<1x8x8xf32>
    %51 = arith.mulf %46, %50 : vector<1x8x8xf32>
    %52 = arith.truncf %51 : vector<1x8x8xf32> to vector<1x8x8xbf16>
    %cst_30 = arith.constant dense<0.000000e+00> : vector<1x8x16xf32>
    %53 = tpu.matmul %52, %38, %cst_30 {dimension_numbers = #tpu.dot_dimension_numbers<[2], [1], [1], [2], [0, 0, 0, 1, 1, 2], [0], [0]>} : vector<1x8x8xbf16>, vector<1x8x16xbf16>, vector<1x8x16xf32> -> vector<1x8x16xf32>
    %54 = vector.extract_strided_slice %29 {offsets = [0, 0, 16], sizes = [1, 8, 16], strides = [1, 1, 1]} : vector<1x8x128xf32> to vector<1x8x16xf32>
    %55 = arith.truncf %54 : vector<1x8x16xf32> to vector<1x8x16xbf16>
    %56 = vector.extract_strided_slice %30 {offsets = [0, 0, 16], sizes = [1, 8, 16], strides = [1, 1, 1]} : vector<1x8x128xf32> to vector<1x8x16xf32>
    %57 = arith.truncf %56 : vector<1x8x16xf32> to vector<1x8x16xbf16>
    %58 = vector.extract_strided_slice %31 {offsets = [0, 0, 16], sizes = [1, 8, 16], strides = [1, 1, 1]} : vector<1x8x128xf32> to vector<1x8x16xf32>
    %59 = arith.truncf %58 : vector<1x8x16xf32> to vector<1x8x16xbf16>
    %cst_31 = arith.constant dense<0.000000e+00> : vector<1x8x8xf32>
    %60 = tpu.matmul %55, %57, %cst_31 {dimension_numbers = #tpu.dot_dimension_numbers<[2], [2], [1], [1], [0, 0, 0, 1, 1, 1], [0], [0]>} : vector<1x8x16xbf16>, vector<1x8x16xbf16>, vector<1x8x8xf32> -> vector<1x8x8xf32>
    %61 = vector.broadcast %32 : vector<1x1x8xf32> to vector<1x8x8xf32>
    %62 = arith.addf %60, %61 : vector<1x8x8xf32>
    %cst_32 = arith.constant dense<0xFF800000> : vector<1x8xf32>
    %63 = vector.multi_reduction <maximumf>, %62, %cst_32 [2] : vector<1x8x8xf32> to vector<1x8xf32>
    %64 = vector.shape_cast %63 : vector<1x8xf32> to vector<1x8x1xf32>
    %65 = vector.broadcast %64 : vector<1x8x1xf32> to vector<1x8x8xf32>
    %66 = arith.subf %62, %65 : vector<1x8x8xf32>
    %67 = math.exp %66 : vector<1x8x8xf32>
    %cst_33 = arith.constant dense<0.000000e+00> : vector<1x8xf32>
    %68 = vector.multi_reduction <add>, %67, %cst_33 [2] : vector<1x8x8xf32> to vector<1x8xf32>
    %69 = vector.shape_cast %68 : vector<1x8xf32> to vector<1x8x1xf32>
    %70 = tpu.reciprocal %69 {approx = true} : vector<1x8x1xf32> -> vector<1x8x1xf32>
    %71 = vector.broadcast %70 : vector<1x8x1xf32> to vector<1x8x8xf32>
    %72 = arith.mulf %67, %71 : vector<1x8x8xf32>
    %73 = arith.truncf %72 : vector<1x8x8xf32> to vector<1x8x8xbf16>
    %cst_34 = arith.constant dense<0.000000e+00> : vector<1x8x16xf32>
    %74 = tpu.matmul %73, %59, %cst_34 {dimension_numbers = #tpu.dot_dimension_numbers<[2], [1], [1], [2], [0, 0, 0, 1, 1, 2], [0], [0]>} : vector<1x8x8xbf16>, vector<1x8x16xbf16>, vector<1x8x16xf32> -> vector<1x8x16xf32>
    %75 = vector.extract_strided_slice %29 {offsets = [0, 0, 32], sizes = [1, 8, 16], strides = [1, 1, 1]} : vector<1x8x128xf32> to vector<1x8x16xf32>
    %76 = arith.truncf %75 : vector<1x8x16xf32> to vector<1x8x16xbf16>
    %77 = vector.extract_strided_slice %30 {offsets = [0, 0, 32], sizes = [1, 8, 16], strides = [1, 1, 1]} : vector<1x8x128xf32> to vector<1x8x16xf32>
    %78 = arith.truncf %77 : vector<1x8x16xf32> to vector<1x8x16xbf16>
    %79 = vector.extract_strided_slice %31 {offsets = [0, 0, 32], sizes = [1, 8, 16], strides = [1, 1, 1]} : vector<1x8x128xf32> to vector<1x8x16xf32>
    %80 = arith.truncf %79 : vector<1x8x16xf32> to vector<1x8x16xbf16>
    %cst_35 = arith.constant dense<0.000000e+00> : vector<1x8x8xf32>
    %81 = tpu.matmul %76, %78, %cst_35 {dimension_numbers = #tpu.dot_dimension_numbers<[2], [2], [1], [1], [0, 0, 0, 1, 1, 1], [0], [0]>} : vector<1x8x16xbf16>, vector<1x8x16xbf16>, vector<1x8x8xf32> -> vector<1x8x8xf32>
    %82 = vector.broadcast %32 : vector<1x1x8xf32> to vector<1x8x8xf32>
    %83 = arith.addf %81, %82 : vector<1x8x8xf32>
    %cst_36 = arith.constant dense<0xFF800000> : vector<1x8xf32>
    %84 = vector.multi_reduction <maximumf>, %83, %cst_36 [2] : vector<1x8x8xf32> to vector<1x8xf32>
    %85 = vector.shape_cast %84 : vector<1x8xf32> to vector<1x8x1xf32>
    %86 = vector.broadcast %85 : vector<1x8x1xf32> to vector<1x8x8xf32>
    %87 = arith.subf %83, %86 : vector<1x8x8xf32>
    %88 = math.exp %87 : vector<1x8x8xf32>
    %cst_37 = arith.constant dense<0.000000e+00> : vector<1x8xf32>
    %89 = vector.multi_reduction <add>, %88, %cst_37 [2] : vector<1x8x8xf32> to vector<1x8xf32>
    %90 = vector.shape_cast %89 : vector<1x8xf32> to vector<1x8x1xf32>
    %91 = tpu.reciprocal %90 {approx = true} : vector<1x8x1xf32> -> vector<1x8x1xf32>
    %92 = vector.broadcast %91 : vector<1x8x1xf32> to vector<1x8x8xf32>
    %93 = arith.mulf %88, %92 : vector<1x8x8xf32>
    %94 = arith.truncf %93 : vector<1x8x8xf32> to vector<1x8x8xbf16>
    %cst_38 = arith.constant dense<0.000000e+00> : vector<1x8x16xf32>
    %95 = tpu.matmul %94, %80, %cst_38 {dimension_numbers = #tpu.dot_dimension_numbers<[2], [1], [1], [2], [0, 0, 0, 1, 1, 2], [0], [0]>} : vector<1x8x8xbf16>, vector<1x8x16xbf16>, vector<1x8x16xf32> -> vector<1x8x16xf32>
    %96 = vector.extract_strided_slice %29 {offsets = [0, 0, 48], sizes = [1, 8, 16], strides = [1, 1, 1]} : vector<1x8x128xf32> to vector<1x8x16xf32>
    %97 = arith.truncf %96 : vector<1x8x16xf32> to vector<1x8x16xbf16>
    %98 = vector.extract_strided_slice %30 {offsets = [0, 0, 48], sizes = [1, 8, 16], strides = [1, 1, 1]} : vector<1x8x128xf32> to vector<1x8x16xf32>
    %99 = arith.truncf %98 : vector<1x8x16xf32> to vector<1x8x16xbf16>
    %100 = vector.extract_strided_slice %31 {offsets = [0, 0, 48], sizes = [1, 8, 16], strides = [1, 1, 1]} : vector<1x8x128xf32> to vector<1x8x16xf32>
    %101 = arith.truncf %100 : vector<1x8x16xf32> to vector<1x8x16xbf16>
    %cst_39 = arith.constant dense<0.000000e+00> : vector<1x8x8xf32>
    %102 = tpu.matmul %97, %99, %cst_39 {dimension_numbers = #tpu.dot_dimension_numbers<[2], [2], [1], [1], [0, 0, 0, 1, 1, 1], [0], [0]>} : vector<1x8x16xbf16>, vector<1x8x16xbf16>, vector<1x8x8xf32> -> vector<1x8x8xf32>
    %103 = vector.broadcast %32 : vector<1x1x8xf32> to vector<1x8x8xf32>
    %104 = arith.addf %102, %103 : vector<1x8x8xf32>
    %cst_40 = arith.constant dense<0xFF800000> : vector<1x8xf32>
    %105 = vector.multi_reduction <maximumf>, %104, %cst_40 [2] : vector<1x8x8xf32> to vector<1x8xf32>
    %106 = vector.shape_cast %105 : vector<1x8xf32> to vector<1x8x1xf32>
    %107 = vector.broadcast %106 : vector<1x8x1xf32> to vector<1x8x8xf32>
    %108 = arith.subf %104, %107 : vector<1x8x8xf32>
    %109 = math.exp %108 : vector<1x8x8xf32>
    %cst_41 = arith.constant dense<0.000000e+00> : vector<1x8xf32>
    %110 = vector.multi_reduction <add>, %109, %cst_41 [2] : vector<1x8x8xf32> to vector<1x8xf32>
    %111 = vector.shape_cast %110 : vector<1x8xf32> to vector<1x8x1xf32>
    %112 = tpu.reciprocal %111 {approx = true} : vector<1x8x1xf32> -> vector<1x8x1xf32>
    %113 = vector.broadcast %112 : vector<1x8x1xf32> to vector<1x8x8xf32>
    %114 = arith.mulf %109, %113 : vector<1x8x8xf32>
    %115 = arith.truncf %114 : vector<1x8x8xf32> to vector<1x8x8xbf16>
    %cst_42 = arith.constant dense<0.000000e+00> : vector<1x8x16xf32>
    %116 = tpu.matmul %115, %101, %cst_42 {dimension_numbers = #tpu.dot_dimension_numbers<[2], [1], [1], [2], [0, 0, 0, 1, 1, 2], [0], [0]>} : vector<1x8x8xbf16>, vector<1x8x16xbf16>, vector<1x8x16xf32> -> vector<1x8x16xf32>
    %117 = vector.extract_strided_slice %29 {offsets = [0, 0, 64], sizes = [1, 8, 16], strides = [1, 1, 1]} : vector<1x8x128xf32> to vector<1x8x16xf32>
    %118 = arith.truncf %117 : vector<1x8x16xf32> to vector<1x8x16xbf16>
    %119 = vector.extract_strided_slice %30 {offsets = [0, 0, 64], sizes = [1, 8, 16], strides = [1, 1, 1]} : vector<1x8x128xf32> to vector<1x8x16xf32>
    %120 = arith.truncf %119 : vector<1x8x16xf32> to vector<1x8x16xbf16>
    %121 = vector.extract_strided_slice %31 {offsets = [0, 0, 64], sizes = [1, 8, 16], strides = [1, 1, 1]} : vector<1x8x128xf32> to vector<1x8x16xf32>
    %122 = arith.truncf %121 : vector<1x8x16xf32> to vector<1x8x16xbf16>
    %cst_43 = arith.constant dense<0.000000e+00> : vector<1x8x8xf32>
    %123 = tpu.matmul %118, %120, %cst_43 {dimension_numbers = #tpu.dot_dimension_numbers<[2], [2], [1], [1], [0, 0, 0, 1, 1, 1], [0], [0]>} : vector<1x8x16xbf16>, vector<1x8x16xbf16>, vector<1x8x8xf32> -> vector<1x8x8xf32>
    %124 = vector.broadcast %32 : vector<1x1x8xf32> to vector<1x8x8xf32>
    %125 = arith.addf %123, %124 : vector<1x8x8xf32>
    %cst_44 = arith.constant dense<0xFF800000> : vector<1x8xf32>
    %126 = vector.multi_reduction <maximumf>, %125, %cst_44 [2] : vector<1x8x8xf32> to vector<1x8xf32>
    %127 = vector.shape_cast %126 : vector<1x8xf32> to vector<1x8x1xf32>
    %128 = vector.broadcast %127 : vector<1x8x1xf32> to vector<1x8x8xf32>
    %129 = arith.subf %125, %128 : vector<1x8x8xf32>
    %130 = math.exp %129 : vector<1x8x8xf32>
    %cst_45 = arith.constant dense<0.000000e+00> : vector<1x8xf32>
    %131 = vector.multi_reduction <add>, %130, %cst_45 [2] : vector<1x8x8xf32> to vector<1x8xf32>
    %132 = vector.shape_cast %131 : vector<1x8xf32> to vector<1x8x1xf32>
    %133 = tpu.reciprocal %132 {approx = true} : vector<1x8x1xf32> -> vector<1x8x1xf32>
    %134 = vector.broadcast %133 : vector<1x8x1xf32> to vector<1x8x8xf32>
    %135 = arith.mulf %130, %134 : vector<1x8x8xf32>
    %136 = arith.truncf %135 : vector<1x8x8xf32> to vector<1x8x8xbf16>
    %cst_46 = arith.constant dense<0.000000e+00> : vector<1x8x16xf32>
    %137 = tpu.matmul %136, %122, %cst_46 {dimension_numbers = #tpu.dot_dimension_numbers<[2], [1], [1], [2], [0, 0, 0, 1, 1, 2], [0], [0]>} : vector<1x8x8xbf16>, vector<1x8x16xbf16>, vector<1x8x16xf32> -> vector<1x8x16xf32>
    %138 = vector.extract_strided_slice %29 {offsets = [0, 0, 80], sizes = [1, 8, 16], strides = [1, 1, 1]} : vector<1x8x128xf32> to vector<1x8x16xf32>
    %139 = arith.truncf %138 : vector<1x8x16xf32> to vector<1x8x16xbf16>
    %140 = vector.extract_strided_slice %30 {offsets = [0, 0, 80], sizes = [1, 8, 16], strides = [1, 1, 1]} : vector<1x8x128xf32> to vector<1x8x16xf32>
    %141 = arith.truncf %140 : vector<1x8x16xf32> to vector<1x8x16xbf16>
    %142 = vector.extract_strided_slice %31 {offsets = [0, 0, 80], sizes = [1, 8, 16], strides = [1, 1, 1]} : vector<1x8x128xf32> to vector<1x8x16xf32>
    %143 = arith.truncf %142 : vector<1x8x16xf32> to vector<1x8x16xbf16>
    %cst_47 = arith.constant dense<0.000000e+00> : vector<1x8x8xf32>
    %144 = tpu.matmul %139, %141, %cst_47 {dimension_numbers = #tpu.dot_dimension_numbers<[2], [2], [1], [1], [0, 0, 0, 1, 1, 1], [0], [0]>} : vector<1x8x16xbf16>, vector<1x8x16xbf16>, vector<1x8x8xf32> -> vector<1x8x8xf32>
    %145 = vector.broadcast %32 : vector<1x1x8xf32> to vector<1x8x8xf32>
    %146 = arith.addf %144, %145 : vector<1x8x8xf32>
    %cst_48 = arith.constant dense<0xFF800000> : vector<1x8xf32>
    %147 = vector.multi_reduction <maximumf>, %146, %cst_48 [2] : vector<1x8x8xf32> to vector<1x8xf32>
    %148 = vector.shape_cast %147 : vector<1x8xf32> to vector<1x8x1xf32>
    %149 = vector.broadcast %148 : vector<1x8x1xf32> to vector<1x8x8xf32>
    %150 = arith.subf %146, %149 : vector<1x8x8xf32>
    %151 = math.exp %150 : vector<1x8x8xf32>
    %cst_49 = arith.constant dense<0.000000e+00> : vector<1x8xf32>
    %152 = vector.multi_reduction <add>, %151, %cst_49 [2] : vector<1x8x8xf32> to vector<1x8xf32>
    %153 = vector.shape_cast %152 : vector<1x8xf32> to vector<1x8x1xf32>
    %154 = tpu.reciprocal %153 {approx = true} : vector<1x8x1xf32> -> vector<1x8x1xf32>
    %155 = vector.broadcast %154 : vector<1x8x1xf32> to vector<1x8x8xf32>
    %156 = arith.mulf %151, %155 : vector<1x8x8xf32>
    %157 = arith.truncf %156 : vector<1x8x8xf32> to vector<1x8x8xbf16>
    %cst_50 = arith.constant dense<0.000000e+00> : vector<1x8x16xf32>
    %158 = tpu.matmul %157, %143, %cst_50 {dimension_numbers = #tpu.dot_dimension_numbers<[2], [1], [1], [2], [0, 0, 0, 1, 1, 2], [0], [0]>} : vector<1x8x8xbf16>, vector<1x8x16xbf16>, vector<1x8x16xf32> -> vector<1x8x16xf32>
    %159 = vector.extract_strided_slice %29 {offsets = [0, 0, 96], sizes = [1, 8, 16], strides = [1, 1, 1]} : vector<1x8x128xf32> to vector<1x8x16xf32>
    %160 = arith.truncf %159 : vector<1x8x16xf32> to vector<1x8x16xbf16>
    %161 = vector.extract_strided_slice %30 {offsets = [0, 0, 96], sizes = [1, 8, 16], strides = [1, 1, 1]} : vector<1x8x128xf32> to vector<1x8x16xf32>
    %162 = arith.truncf %161 : vector<1x8x16xf32> to vector<1x8x16xbf16>
    %163 = vector.extract_strided_slice %31 {offsets = [0, 0, 96], sizes = [1, 8, 16], strides = [1, 1, 1]} : vector<1x8x128xf32> to vector<1x8x16xf32>
    %164 = arith.truncf %163 : vector<1x8x16xf32> to vector<1x8x16xbf16>
    %cst_51 = arith.constant dense<0.000000e+00> : vector<1x8x8xf32>
    %165 = tpu.matmul %160, %162, %cst_51 {dimension_numbers = #tpu.dot_dimension_numbers<[2], [2], [1], [1], [0, 0, 0, 1, 1, 1], [0], [0]>} : vector<1x8x16xbf16>, vector<1x8x16xbf16>, vector<1x8x8xf32> -> vector<1x8x8xf32>
    %166 = vector.broadcast %32 : vector<1x1x8xf32> to vector<1x8x8xf32>
    %167 = arith.addf %165, %166 : vector<1x8x8xf32>
    %cst_52 = arith.constant dense<0xFF800000> : vector<1x8xf32>
    %168 = vector.multi_reduction <maximumf>, %167, %cst_52 [2] : vector<1x8x8xf32> to vector<1x8xf32>
    %169 = vector.shape_cast %168 : vector<1x8xf32> to vector<1x8x1xf32>
    %170 = vector.broadcast %169 : vector<1x8x1xf32> to vector<1x8x8xf32>
    %171 = arith.subf %167, %170 : vector<1x8x8xf32>
    %172 = math.exp %171 : vector<1x8x8xf32>
    %cst_53 = arith.constant dense<0.000000e+00> : vector<1x8xf32>
    %173 = vector.multi_reduction <add>, %172, %cst_53 [2] : vector<1x8x8xf32> to vector<1x8xf32>
    %174 = vector.shape_cast %173 : vector<1x8xf32> to vector<1x8x1xf32>
    %175 = tpu.reciprocal %174 {approx = true} : vector<1x8x1xf32> -> vector<1x8x1xf32>
    %176 = vector.broadcast %175 : vector<1x8x1xf32> to vector<1x8x8xf32>
    %177 = arith.mulf %172, %176 : vector<1x8x8xf32>
    %178 = arith.truncf %177 : vector<1x8x8xf32> to vector<1x8x8xbf16>
    %cst_54 = arith.constant dense<0.000000e+00> : vector<1x8x16xf32>
    %179 = tpu.matmul %178, %164, %cst_54 {dimension_numbers = #tpu.dot_dimension_numbers<[2], [1], [1], [2], [0, 0, 0, 1, 1, 2], [0], [0]>} : vector<1x8x8xbf16>, vector<1x8x16xbf16>, vector<1x8x16xf32> -> vector<1x8x16xf32>
    %180 = vector.extract_strided_slice %29 {offsets = [0, 0, 112], sizes = [1, 8, 16], strides = [1, 1, 1]} : vector<1x8x128xf32> to vector<1x8x16xf32>
    %181 = arith.truncf %180 : vector<1x8x16xf32> to vector<1x8x16xbf16>
    %182 = vector.extract_strided_slice %30 {offsets = [0, 0, 112], sizes = [1, 8, 16], strides = [1, 1, 1]} : vector<1x8x128xf32> to vector<1x8x16xf32>
    %183 = arith.truncf %182 : vector<1x8x16xf32> to vector<1x8x16xbf16>
    %184 = vector.extract_strided_slice %31 {offsets = [0, 0, 112], sizes = [1, 8, 16], strides = [1, 1, 1]} : vector<1x8x128xf32> to vector<1x8x16xf32>
    %185 = arith.truncf %184 : vector<1x8x16xf32> to vector<1x8x16xbf16>
    %cst_55 = arith.constant dense<0.000000e+00> : vector<1x8x8xf32>
    %186 = tpu.matmul %181, %183, %cst_55 {dimension_numbers = #tpu.dot_dimension_numbers<[2], [2], [1], [1], [0, 0, 0, 1, 1, 1], [0], [0]>} : vector<1x8x16xbf16>, vector<1x8x16xbf16>, vector<1x8x8xf32> -> vector<1x8x8xf32>
    %187 = vector.broadcast %32 : vector<1x1x8xf32> to vector<1x8x8xf32>
    %188 = arith.addf %186, %187 : vector<1x8x8xf32>
    %cst_56 = arith.constant dense<0xFF800000> : vector<1x8xf32>
    %189 = vector.multi_reduction <maximumf>, %188, %cst_56 [2] : vector<1x8x8xf32> to vector<1x8xf32>
    %190 = vector.shape_cast %189 : vector<1x8xf32> to vector<1x8x1xf32>
    %191 = vector.broadcast %190 : vector<1x8x1xf32> to vector<1x8x8xf32>
    %192 = arith.subf %188, %191 : vector<1x8x8xf32>
    %193 = math.exp %192 : vector<1x8x8xf32>
    %cst_57 = arith.constant dense<0.000000e+00> : vector<1x8xf32>
    %194 = vector.multi_reduction <add>, %193, %cst_57 [2] : vector<1x8x8xf32> to vector<1x8xf32>
    %195 = vector.shape_cast %194 : vector<1x8xf32> to vector<1x8x1xf32>
    %196 = tpu.reciprocal %195 {approx = true} : vector<1x8x1xf32> -> vector<1x8x1xf32>
    %197 = vector.broadcast %196 : vector<1x8x1xf32> to vector<1x8x8xf32>
    %198 = arith.mulf %193, %197 : vector<1x8x8xf32>
    %199 = arith.truncf %198 : vector<1x8x8xf32> to vector<1x8x8xbf16>
    %cst_58 = arith.constant dense<0.000000e+00> : vector<1x8x16xf32>
    %200 = tpu.matmul %199, %185, %cst_58 {dimension_numbers = #tpu.dot_dimension_numbers<[2], [1], [1], [2], [0, 0, 0, 1, 1, 2], [0], [0]>} : vector<1x8x8xbf16>, vector<1x8x16xbf16>, vector<1x8x16xf32> -> vector<1x8x16xf32>
    %201 = tpu.concatenate %53, %74, %95, %116, %137, %158, %179, %200 in 2 : vector<1x8x16xf32>, vector<1x8x16xf32>, vector<1x8x16xf32>, vector<1x8x16xf32>, vector<1x8x16xf32>, vector<1x8x16xf32>, vector<1x8x16xf32>, vector<1x8x16xf32> -> vector<1x8x128xf32>
    %202 = vector.shape_cast %201 : vector<1x8x128xf32> to vector<8x128xf32>
    %203 = arith.truncf %202 : vector<8x128xf32> to vector<8x128xbf16>
    %c0_59 = arith.constant 0 : index
    %c0_60 = arith.constant 0 : index
    %c0_61 = arith.constant 0 : index
    %204 = vector.load %arg10[%c0_59, %c0_60, %c0_61] : memref<1x128x128xbf16, #tpu.memory_space<vmem>>, vector<1x128x128xbf16>
    %205 = vector.shape_cast %204 : vector<1x128x128xbf16> to vector<128x128xbf16>
    %cst_62 = arith.constant dense<0.000000e+00> : vector<8x128xf32>
    %206 = tpu.matmul %203, %205, %cst_62 {dimension_numbers = #tpu.dot_dimension_numbers<[1], [0], [0], [1], [0, 0, 1, 1], [], []>} : vector<8x128xbf16>, vector<128x128xbf16>, vector<8x128xf32> -> vector<8x128xf32>
    %c0_63 = arith.constant 0 : index
    %c0_64 = arith.constant 0 : index
    %c0_65 = arith.constant 0 : index
    %207 = vector.load %arg11[%c0_63, %c0_64, %c0_65] : memref<1x1x128xf32, #tpu.memory_space<vmem>>, vector<1x1x128xf32>
    %208 = vector.shape_cast %207 : vector<1x1x128xf32> to vector<1x128xf32>
    %209 = vector.broadcast %208 : vector<1x128xf32> to vector<8x128xf32>
    %210 = arith.addf %206, %209 : vector<8x128xf32>
    %211 = arith.addf %4, %210 : vector<8x128xf32>
    %c0_66 = arith.constant 0 : index
    %c0_67 = arith.constant 0 : index
    %c0_68 = arith.constant 0 : index
    %212 = vector.load %arg12[%c0_66, %c0_67, %c0_68] : memref<1x1x128xf32, #tpu.memory_space<vmem>>, vector<1x1x128xf32>
    %213 = vector.shape_cast %212 : vector<1x1x128xf32> to vector<1x128xf32>
    %c0_69 = arith.constant 0 : index
    %c0_70 = arith.constant 0 : index
    %c0_71 = arith.constant 0 : index
    %214 = vector.load %arg13[%c0_69, %c0_70, %c0_71] : memref<1x1x128xf32, #tpu.memory_space<vmem>>, vector<1x1x128xf32>
    %215 = vector.shape_cast %214 : vector<1x1x128xf32> to vector<1x128xf32>
    %cst_72 = arith.constant dense<0.000000e+00> : vector<8xf32>
    %216 = vector.multi_reduction <add>, %211, %cst_72 [1] : vector<8x128xf32> to vector<8xf32>
    %217 = vector.shape_cast %216 : vector<8xf32> to vector<8x1xf32>
    %cst_73 = arith.constant 1.280000e+02 : f32
    %218 = vector.broadcast %cst_73 : f32 to vector<8x1xf32>
    %219 = arith.divf %217, %218 : vector<8x1xf32>
    %220 = vector.broadcast %219 : vector<8x1xf32> to vector<8x128xf32>
    %221 = arith.subf %211, %220 : vector<8x128xf32>
    %222 = arith.mulf %221, %221 : vector<8x128xf32>
    %cst_74 = arith.constant dense<0.000000e+00> : vector<8xf32>
    %223 = vector.multi_reduction <add>, %222, %cst_74 [1] : vector<8x128xf32> to vector<8xf32>
    %224 = vector.shape_cast %223 : vector<8xf32> to vector<8x1xf32>
    %cst_75 = arith.constant 1.280000e+02 : f32
    %225 = vector.broadcast %cst_75 : f32 to vector<8x1xf32>
    %226 = arith.divf %224, %225 : vector<8x1xf32>
    %227 = vector.broadcast %219 : vector<8x1xf32> to vector<8x128xf32>
    %228 = arith.subf %211, %227 : vector<8x128xf32>
    %cst_76 = arith.constant 9.99999974E-6 : f32
    %229 = vector.broadcast %cst_76 : f32 to vector<8x1xf32>
    %230 = arith.addf %226, %229 : vector<8x1xf32>
    %231 = math.rsqrt %230 : vector<8x1xf32>
    %232 = vector.broadcast %231 : vector<8x1xf32> to vector<8x128xf32>
    %233 = arith.mulf %228, %232 : vector<8x128xf32>
    %234 = vector.broadcast %213 : vector<1x128xf32> to vector<8x128xf32>
    %235 = arith.mulf %233, %234 : vector<8x128xf32>
    %236 = vector.broadcast %215 : vector<1x128xf32> to vector<8x128xf32>
    %237 = arith.addf %235, %236 : vector<8x128xf32>
    %238 = arith.truncf %237 : vector<8x128xf32> to vector<8x128xbf16>
    %c0_77 = arith.constant 0 : index
    %c0_78 = arith.constant 0 : index
    %c0_79 = arith.constant 0 : index
    %239 = vector.load %arg14[%c0_77, %c0_78, %c0_79] : memref<1x128x512xbf16, #tpu.memory_space<vmem>>, vector<1x128x512xbf16>
    %240 = vector.shape_cast %239 : vector<1x128x512xbf16> to vector<128x512xbf16>
    %cst_80 = arith.constant dense<0.000000e+00> : vector<8x512xf32>
    %241 = tpu.matmul %238, %240, %cst_80 {dimension_numbers = #tpu.dot_dimension_numbers<[1], [0], [0], [1], [0, 0, 1, 1], [], []>} : vector<8x128xbf16>, vector<128x512xbf16>, vector<8x512xf32> -> vector<8x512xf32>
    %c0_81 = arith.constant 0 : index
    %c0_82 = arith.constant 0 : index
    %c0_83 = arith.constant 0 : index
    %242 = vector.load %arg15[%c0_81, %c0_82, %c0_83] : memref<1x1x512xf32, #tpu.memory_space<vmem>>, vector<1x1x512xf32>
    %243 = vector.shape_cast %242 : vector<1x1x512xf32> to vector<1x512xf32>
    %244 = vector.broadcast %243 : vector<1x512xf32> to vector<8x512xf32>
    %245 = arith.addf %241, %244 : vector<8x512xf32>
    %cst_84 = arith.constant 0.000000e+00 : f32
    %246 = vector.broadcast %cst_84 : f32 to vector<8x512xf32>
    %247 = arith.maximumf %245, %246 : vector<8x512xf32>
    %248 = arith.truncf %247 : vector<8x512xf32> to vector<8x512xbf16>
    %c0_85 = arith.constant 0 : index
    %c0_86 = arith.constant 0 : index
    %c0_87 = arith.constant 0 : index
    %249 = vector.load %arg16[%c0_85, %c0_86, %c0_87] : memref<1x512x128xbf16, #tpu.memory_space<vmem>>, vector<1x512x128xbf16>
    %250 = vector.shape_cast %249 : vector<1x512x128xbf16> to vector<512x128xbf16>
    %cst_88 = arith.constant dense<0.000000e+00> : vector<8x128xf32>
    %251 = tpu.matmul %248, %250, %cst_88 {dimension_numbers = #tpu.dot_dimension_numbers<[1], [0], [0], [1], [0, 0, 1, 1], [], []>} : vector<8x512xbf16>, vector<512x128xbf16>, vector<8x128xf32> -> vector<8x128xf32>
    %c0_89 = arith.constant 0 : index
    %c0_90 = arith.constant 0 : index
    %c0_91 = arith.constant 0 : index
    %252 = vector.load %arg17[%c0_89, %c0_90, %c0_91] : memref<1x1x128xf32, #tpu.memory_space<vmem>>, vector<1x1x128xf32>
    %253 = vector.shape_cast %252 : vector<1x1x128xf32> to vector<1x128xf32>
    %254 = vector.broadcast %253 : vector<1x128xf32> to vector<8x128xf32>
    %255 = arith.addf %251, %254 : vector<8x128xf32>
    %256 = arith.addf %237, %255 : vector<8x128xf32>
    %c0_92 = arith.constant 0 : index
    %c0_93 = arith.constant 0 : index
    %c0_94 = arith.constant 0 : index
    %257 = vector.load %arg18[%c0_92, %c0_93, %c0_94] : memref<1x1x128xf32, #tpu.memory_space<vmem>>, vector<1x1x128xf32>
    %258 = vector.shape_cast %257 : vector<1x1x128xf32> to vector<1x128xf32>
    %c0_95 = arith.constant 0 : index
    %c0_96 = arith.constant 0 : index
    %c0_97 = arith.constant 0 : index
    %259 = vector.load %arg19[%c0_95, %c0_96, %c0_97] : memref<1x1x128xf32, #tpu.memory_space<vmem>>, vector<1x1x128xf32>
    %260 = vector.shape_cast %259 : vector<1x1x128xf32> to vector<1x128xf32>
    %cst_98 = arith.constant dense<0.000000e+00> : vector<8xf32>
    %261 = vector.multi_reduction <add>, %256, %cst_98 [1] : vector<8x128xf32> to vector<8xf32>
    %262 = vector.shape_cast %261 : vector<8xf32> to vector<8x1xf32>
    %cst_99 = arith.constant 1.280000e+02 : f32
    %263 = vector.broadcast %cst_99 : f32 to vector<8x1xf32>
    %264 = arith.divf %262, %263 : vector<8x1xf32>
    %265 = vector.broadcast %264 : vector<8x1xf32> to vector<8x128xf32>
    %266 = arith.subf %256, %265 : vector<8x128xf32>
    %267 = arith.mulf %266, %266 : vector<8x128xf32>
    %cst_100 = arith.constant dense<0.000000e+00> : vector<8xf32>
    %268 = vector.multi_reduction <add>, %267, %cst_100 [1] : vector<8x128xf32> to vector<8xf32>
    %269 = vector.shape_cast %268 : vector<8xf32> to vector<8x1xf32>
    %cst_101 = arith.constant 1.280000e+02 : f32
    %270 = vector.broadcast %cst_101 : f32 to vector<8x1xf32>
    %271 = arith.divf %269, %270 : vector<8x1xf32>
    %272 = vector.broadcast %264 : vector<8x1xf32> to vector<8x128xf32>
    %273 = arith.subf %256, %272 : vector<8x128xf32>
    %cst_102 = arith.constant 9.99999974E-6 : f32
    %274 = vector.broadcast %cst_102 : f32 to vector<8x1xf32>
    %275 = arith.addf %271, %274 : vector<8x1xf32>
    %276 = math.rsqrt %275 : vector<8x1xf32>
    %277 = vector.broadcast %276 : vector<8x1xf32> to vector<8x128xf32>
    %278 = arith.mulf %273, %277 : vector<8x128xf32>
    %279 = vector.broadcast %258 : vector<1x128xf32> to vector<8x128xf32>
    %280 = arith.mulf %278, %279 : vector<8x128xf32>
    %281 = vector.broadcast %260 : vector<1x128xf32> to vector<8x128xf32>
    %282 = arith.addf %280, %281 : vector<8x128xf32>
    %283 = vector.shape_cast %282 : vector<8x128xf32> to vector<1x8x128xf32>
    %c0_103 = arith.constant 0 : index
    %c0_104 = arith.constant 0 : index
    %c0_105 = arith.constant 0 : index
    %284 = vector.load %arg20[%c0_103, %c0_104, %c0_105] : memref<1x8x128xf32, #tpu.memory_space<vmem>>, vector<1x8x128xf32>
    tpu.vector_store %arg20[%c0_103, %c0_104, %c0_105], %283 {strides = array<i32>} : memref<1x8x128xf32, #tpu.memory_space<vmem>>, vector<1x8x128xf32>,
    return
  }
  func.func @transform_0(%arg0: i32, %arg1: i32) -> (i32, i32, i32) {
    %c0_i32 = arith.constant 0 : i32
    %c0_i32_0 = arith.constant 0 : i32
    %c0_i32_1 = arith.constant 0 : i32
    return %arg0, %c0_i32, %c0_i32_0 : i32, i32, i32
  }
  func.func @transform_1(%arg0: i32, %arg1: i32) -> (i32, i32, i32) {
    %c0_i32 = arith.constant 0 : i32
    %c0_i32_0 = arith.constant 0 : i32
    %c0_i32_1 = arith.constant 0 : i32
    return %arg0, %c0_i32, %c0_i32_0 : i32, i32, i32
  }
  func.func @transform_2(%arg0: i32, %arg1: i32) -> (i32, i32, i32) {
    %c0_i32 = arith.constant 0 : i32
    %c0_i32_0 = arith.constant 0 : i32
    %c0_i32_1 = arith.constant 0 : i32
    return %arg1, %c0_i32, %c0_i32_0 : i32, i32, i32
  }
  func.func @transform_3(%arg0: i32, %arg1: i32) -> (i32, i32, i32) {
    %c0_i32 = arith.constant 0 : i32
    %c0_i32_0 = arith.constant 0 : i32
    %c0_i32_1 = arith.constant 0 : i32
    return %arg1, %c0_i32, %c0_i32_0 : i32, i32, i32
  }
  func.func @transform_4(%arg0: i32, %arg1: i32) -> (i32, i32, i32) {
    %c0_i32 = arith.constant 0 : i32
    %c0_i32_0 = arith.constant 0 : i32
    %c0_i32_1 = arith.constant 0 : i32
    return %arg1, %c0_i32, %c0_i32_0 : i32, i32, i32
  }
  func.func @transform_5(%arg0: i32, %arg1: i32) -> (i32, i32, i32) {
    %c0_i32 = arith.constant 0 : i32
    %c0_i32_0 = arith.constant 0 : i32
    %c0_i32_1 = arith.constant 0 : i32
    return %arg1, %c0_i32, %c0_i32_0 : i32, i32, i32
  }
  func.func @transform_6(%arg0: i32, %arg1: i32) -> (i32, i32, i32) {
    %c0_i32 = arith.constant 0 : i32
    %c0_i32_0 = arith.constant 0 : i32
    %c0_i32_1 = arith.constant 0 : i32
    return %arg1, %c0_i32, %c0_i32_0 : i32, i32, i32
  }
  func.func @transform_7(%arg0: i32, %arg1: i32) -> (i32, i32, i32) {
    %c0_i32 = arith.constant 0 : i32
    %c0_i32_0 = arith.constant 0 : i32
    %c0_i32_1 = arith.constant 0 : i32
    return %arg1, %c0_i32, %c0_i32_0 : i32, i32, i32
  }
  func.func @transform_8(%arg0: i32, %arg1: i32) -> (i32, i32, i32) {
    %c0_i32 = arith.constant 0 : i32
    %c0_i32_0 = arith.constant 0 : i32
    %c0_i32_1 = arith.constant 0 : i32
    return %arg1, %c0_i32, %c0_i32_0 : i32, i32, i32
  }
  func.func @transform_9(%arg0: i32, %arg1: i32) -> (i32, i32, i32) {
    %c0_i32 = arith.constant 0 : i32
    %c0_i32_0 = arith.constant 0 : i32
    %c0_i32_1 = arith.constant 0 : i32
    return %arg1, %c0_i32, %c0_i32_0 : i32, i32, i32
  }
  func.func @transform_10(%arg0: i32, %arg1: i32) -> (i32, i32, i32) {
    %c0_i32 = arith.constant 0 : i32
    %c0_i32_0 = arith.constant 0 : i32
    %c0_i32_1 = arith.constant 0 : i32
    return %arg1, %c0_i32, %c0_i32_0 : i32, i32, i32
  }
  func.func @transform_11(%arg0: i32, %arg1: i32) -> (i32, i32, i32) {
    %c0_i32 = arith.constant 0 : i32
    %c0_i32_0 = arith.constant 0 : i32
    %c0_i32_1 = arith.constant 0 : i32
    return %arg1, %c0_i32, %c0_i32_0 : i32, i32, i32
  }
  func.func @transform_12(%arg0: i32, %arg1: i32) -> (i32, i32, i32) {
    %c0_i32 = arith.constant 0 : i32
    %c0_i32_0 = arith.constant 0 : i32
    %c0_i32_1 = arith.constant 0 : i32
    return %arg1, %c0_i32, %c0_i32_0 : i32, i32, i32
  }
  func.func @transform_13(%arg0: i32, %arg1: i32) -> (i32, i32, i32) {
    %c0_i32 = arith.constant 0 : i32
    %c0_i32_0 = arith.constant 0 : i32
    %c0_i32_1 = arith.constant 0 : i32
    return %arg1, %c0_i32, %c0_i32_0 : i32, i32, i32
  }
  func.func @transform_14(%arg0: i32, %arg1: i32) -> (i32, i32, i32) {
    %c0_i32 = arith.constant 0 : i32
    %c0_i32_0 = arith.constant 0 : i32
    %c0_i32_1 = arith.constant 0 : i32
    return %arg1, %c0_i32, %c0_i32_0 : i32, i32, i32
  }
  func.func @transform_15(%arg0: i32, %arg1: i32) -> (i32, i32, i32) {
    %c0_i32 = arith.constant 0 : i32
    %c0_i32_0 = arith.constant 0 : i32
    %c0_i32_1 = arith.constant 0 : i32
    return %arg1, %c0_i32, %c0_i32_0 : i32, i32, i32
  }
  func.func @transform_16(%arg0: i32, %arg1: i32) -> (i32, i32, i32) {
    %c0_i32 = arith.constant 0 : i32
    %c0_i32_0 = arith.constant 0 : i32
    %c0_i32_1 = arith.constant 0 : i32
    return %arg1, %c0_i32, %c0_i32_0 : i32, i32, i32
  }
  func.func @transform_17(%arg0: i32, %arg1: i32) -> (i32, i32, i32) {
    %c0_i32 = arith.constant 0 : i32
    %c0_i32_0 = arith.constant 0 : i32
    %c0_i32_1 = arith.constant 0 : i32
    return %arg1, %c0_i32, %c0_i32_0 : i32, i32, i32
  }
  func.func @transform_18(%arg0: i32, %arg1: i32) -> (i32, i32, i32) {
    %c0_i32 = arith.constant 0 : i32
    %c0_i32_0 = arith.constant 0 : i32
    %c0_i32_1 = arith.constant 0 : i32
    return %arg0, %c0_i32, %c0_i32_0 : i32, i32, i32
  }
}

</mosaic_0001>

<bundles_post_ra>
// kernel: tpu_custom_call.1
= control target key start
LH: loop header
LB: loop body
LE: loop exit
PB: predicated region body
PF: predicated region fallthrough
CT: control target
= control target key end

     0   :  { %s5580_s0 = inlined_call_operand.hbm [shape: f32[2,8,128], index: 0, kind: input, shape index: {}]   ;;  %s5581_s1 = inlined_call_operand.vmem [shape: f32[2,1,8], index: 1, kind: input, shape index: {}]   ;;  %s5582_s2 = inlined_call_operand.hbm [shape: bf16[2,128,128], index: 2, kind: input, shape index: {}]   ;;  %s5583_s3 = inlined_call_operand.vmem [shape: f32[2,1,128], index: 3, kind: input, shape index: {}]   ;;  %s5584_s4 = inlined_call_operand.hbm [shape: bf16[2,128,128], index: 4, kind: input, shape index: {}]   ;;  %s5585_s5 = inlined_call_operand.vmem [shape: f32[2,1,128], index: 5, kind: input, shape index: {}]   ;;  %s5586_s6 = inlined_call_operand.hbm [shape: bf16[2,128,128], index: 6, kind: input, shape index: {}]   ;;  %s5587_s7 = inlined_call_operand.vmem [shape: f32[2,1,128], index: 7, kind: input, shape index: {}]   ;;  %s5588_s8 = inlined_call_operand.hbm [shape: bf16[2,128,128], index: 8, kind: input, shape index: {}]   ;;  %s5589_s9 = inlined_call_operand.vmem [shape: f32[2,1,128], index: 9, kind: input, shape index: {}]   ;;  %s5590_s10 = inlined_call_operand.vmem [shape: f32[2,1,128], index: 10, kind: input, shape index: {}]   ;;  %s5591_s11 = inlined_call_operand.vmem [shape: f32[2,1,128], index: 11, kind: input, shape index: {}]   ;;  %s5592_s12 = inlined_call_operand.hbm [shape: bf16[2,128,512], index: 12, kind: input, shape index: {}]   ;;  %s5593_s13 = inlined_call_operand.vmem [shape: f32[2,1,512], index: 13, kind: input, shape index: {}]   ;;  %s5594_s14 = inlined_call_operand.hbm [shape: bf16[2,512,128], index: 14, kind: input, shape index: {}]   ;;  %s5595_s15 = inlined_call_operand.vmem [shape: f32[2,1,128], index: 15, kind: input, shape index: {}]   ;;  %s5596_s16 = inlined_call_operand.vmem [shape: f32[2,1,128], index: 16, kind: input, shape index: {}]   ;;  %s5597_s17 = inlined_call_operand.vmem [shape: f32[2,1,128], index: 17, kind: input, shape index: {}]   ;;  %s5598_s18 = inlined_call_operand.hbm [shape: f32[2,8,128], index: 18, kind: output, shape index: {}]  }
   0x1   :  { %5643 = sst [smem:[#allocation41_spill]] %s5580_s0 }
   0x2   :  { %5644 = sst [smem:[#allocation42_spill]] %s5581_s1 }
   0x3   :  { %5645 = sst [smem:[#allocation43_spill]] %s5582_s2 }
   0x4   :  { %5646 = sst [smem:[#allocation44_spill]] %s5583_s3 }
   0x5   :  { %5647 = sst [smem:[#allocation45_spill]] %s5584_s4 }
   0x6   :  { %5648 = sst [smem:[#allocation46_spill]] %s5585_s5 }
   0x7   :  { %5649 = sst [smem:[#allocation47_spill]] %s5586_s6 }
   0x8   :  { %5650 = sst [smem:[#allocation48_spill]] %s5587_s7 }
   0x9   :  { %5651 = sst [smem:[#allocation49_spill]] %s5588_s8 }
   0xa   :  { %5652 = sst [smem:[#allocation50_spill]] %s5589_s9 }
   0xb   :  { %5653 = sst [smem:[#allocation51_spill]] %s5590_s10 }
   0xc   :  { %5654 = sst [smem:[#allocation52_spill]] %s5591_s11 }
   0xd   :  { %5655 = sst [smem:[#allocation53_spill]] %s5592_s12 }
   0xe   :  { %5656 = sst [smem:[#allocation54_spill]] %s5593_s13 }
   0xf   :  { %5657 = sst [smem:[#allocation55_spill]] %s5594_s14 }
  0x10   :  { %5658 = sst [smem:[#allocation56_spill]] %s5595_s15 }
  0x11   :  { %5659 = sst [smem:[#allocation57_spill]] %s5596_s16 }
  0x12   :  { %5660 = sst [smem:[#allocation58_spill]] %s5597_s17 }
  0x13   :  { %5661 = sst [smem:[#allocation59_spill]] %s5598_s18 }
  0x14   :  { %23 = vsyncpa [#allocation3], 0 }
  0x15   :  { %25 = vsyncpa [#allocation3 + $0x1], 0 }
  0x16   :  { %26 = vsyncpa [#allocation6], 0 }
  0x17   :  { %28 = vsyncpa [#allocation6 + $0x1], 0 }
  0x18   :  { %29 = vsyncpa [#allocation9], 0 }
  0x19   :  { %31 = vsyncpa [#allocation9 + $0x1], 0 }
  0x1a   :  { %32 = vsyncpa [#allocation12], 0 }
  0x1b   :  { %34 = vsyncpa [#allocation12 + $0x1], 0 }
  0x1c   :  { %35 = vsyncpa [#allocation4], 0 }
  0x1d   :  { %37 = vsyncpa [#allocation4 + $0x1], 0  ;;  %s4622_s27 = smov 0   ;;  %s4624_s28 = smov 0  }
  0x1e   :  { %s4626_s29 = smov 0   ;;  %s4628_s30 = smov 0  }
  0x1f   :  { %s4630_s0 = smov 0   ;;  %s4632_s19 = smov 0  }
  0x20   :  { %s4634_s1 = smov 0   ;;  %s4636_s20 = smov 0  }
  0x21   :  { %s4638_s21 = smov 0   ;;  %s4640_s22 = smov 0  }
  0x22   :  { %s4642_s2 = smov 0  }
  0x23 LB: > { %5662 = sst [smem:[#allocation20_spill]] %s4467_s28  ;;  %p5604_p0 = scmp.eq.s32.totalorder %s4503_s2, 0  ;;  %s4503_s2 = sphi %s4642_s2, %s43_s2   ;;  %s4499_s22 = sphi %s4640_s22, %s5769_s22   ;;  %s4495_s21 = sphi %s4638_s21, %s5768_s21   ;;  %s4491_s20 = sphi %s4636_s20, %s5767_s20   ;;  %s4487_s1 = sphi %s4634_s1, %s5766_s1   ;;  %s4483_s19 = sphi %s4632_s19, %s5765_s19   ;;  %s4479_s0 = sphi %s4630_s0, %s5764_s0   ;;  %s4475_s30 = sphi %s4628_s30, %s5763_s30   ;;  %s4471_s29 = sphi %s4626_s29, %s5762_s29   ;;  %s4467_s28 = sphi %s4624_s28, %s5761_s28   ;;  %s4463_s27 = sphi %s4622_s27, %s5760_s27  }
  0x24   : > { %5663 = sst [smem:[#allocation21_spill]] %s4471_s29  ;;  %p121_p1 = scmp.ne.s32.totalorder %s4471_s29, %s4467_s28 }
  0x25   : > { %5664 = sst [smem:[#allocation22_spill]] %s4475_s30  ;;  %p5603_p2 = scmp.lt.s32.totalorder %s4503_s2, 4 }
  0x26   : > { %5665 = sst [smem:[#allocation23_spill]] %s4479_s0  ;;  %s4682_s23 = sand.u32 1, %s4503_s2  }
  0x27   : > { %5666 = sst [smem:[#allocation24_spill]] %s4483_s19  ;;  %p123_p3 = por %p121_p1, %p5604_p0 }
  0x28   : > { %5667 = sst [smem:[#allocation25_spill]] %s4487_s1  ;;  %s5602_s24 = sand.u32 1, %s4471_s29  }
  0x29   : > { %5668 = sst [smem:[#allocation26_spill]] %s4491_s20  ;;  %s4688_s25 = sshll.u32 %s4495_s21, 10 }
  0x2a   : > { %5669 = sst [smem:[#allocation27_spill]] %s4495_s21  ;;  %s4692_s26 = sshll.u32 %s5602_s24, 6 }
  0x2b   : > { %5670 = sst [smem:[#allocation28_spill]] %s4499_s22  ;;  %s5673_s16 = sld [smem:[#allocation43_spill]] }
  0x2c   : > { %5671 = sst [smem:[#allocation29_spill]] %s4503_s2  ;;  %p4702_p4 = pnand %p5603_p2, %p123_p3 }
  0x2d   : > { %5672 = sst [smem:[#allocation30_spill]] %s4682_s23  ;;  %s595_s11 = scalar_lea.vmem [#allocation5], %s4692_s26 }
  0x2e   : > { %s5674_s15 = scalar_select %p4702_p4, 1, 0 }
  0x2f   : > { %s602_s10 = sshll.u32 %s595_s11, 4  ;;  %p4715_p7 = pneg %p4702_p4  ;;  %s4707_s10 = int_to_ptr.vmem [resolvable:$true] %s602_s10 }
  0x30   : > { %5675 = sst [smem:[#allocation31_spill]] %s5674_s15 }
  0x31   : > { %s4698_s13 = scalar_lea.hbm %s5673_s16, %s4688_s25  ;;  %s4164_s5 = scalar_lea.hbm %s5673_s16, 2048 }
  0x32   : > { %s4159_s17 = scalar_lea.hbm %s4698_s13, 1024  ;;  %p4165_p10 = scmp.lt.u32.totalorder %s4698_s13, %s5673_s16 }
  0x33   : > { %p4160_p6 = scmp.ne.s32.totalorder %s4698_s13, %s4159_s17  ;;  %p4166_p11 = scmp.lt.u32.totalorder %s4164_s5, %s4159_s17 }
  0x34   : > { %p4168_p13 = scmp.lt.u32.totalorder %s4159_s17, %s4698_s13 }
  0x35   : > { %p4162_p8 = pnand %p4715_p7, %p4160_p6  ;;  %p4167_p12 = por %p4166_p11, %p4165_p10 }
  0x37   : > { %p4163_p9 = pneg %p4162_p8  ;;  %p4169_p1 = por %p4168_p13, %p4167_p12 }
  0x39   : > { %p4170_p3 = pnand %p4169_p1, %p4163_p9 }
  0x3b   : > { %4173 = shalt.err (!%p4170_p3)
}
  0x3c   : > { %s4174_s24 = scalar_lea.vmem %s4707_s10, 1024  ;;  %s4505_s7 = smov [#allocation5]  }
  0x3d   : > { %p4175_p6 = scmp.ne.s32.totalorder %s4707_s10, %s4174_s24  ;;  %s4179_s9 = sshll.u32 %s4505_s7, 4  ;;  %s4180_s9 = int_to_ptr.vmem [resolvable:$false] %s4179_s9 }
  0x3e   : > { %s4181_s3 = scalar_lea.vmem %s4180_s9, 2048  ;;  %p4182_p0 = scmp.lt.s32.totalorder %s4707_s10, %s4180_s9 }
  0x3f   : > { %p4177_p8 = pnand %p4175_p6, %p4715_p7  ;;  %p4183_p5 = scmp.lt.s32.totalorder %s4181_s3, %s4174_s24 }
  0x41   : > { %p4178_p2 = pneg %p4177_p8  ;;  %p4184_p10 = por %p4183_p5, %p4182_p0 }
  0x43   : > { %p4185_p11 = pnand %p4184_p10, %p4178_p2 }
  0x45   : > { %4188 = shalt.err (!%p4185_p11)
}
  0x46   : > { %s5607_s5 = smov 64   ;;  %s5609_s17 = smov 4  }
  0x47   : > { %s5677_s24 = scalar_lea.sflag [#allocation6], %s4682_s23  ;;  %p776_p0 = scmp.lt.s32.totalorder %s4503_s2, 5 }
  0x48   : > { %3886 = dma.hbm_to_vmem [thread:$0]  (!%p4702_p4), %s4698_s13, 1024, %s4707_s10, %s5677_s24, %s5607_s5, %s5607_s5, %s5609_s17  }
  0x49   : > { %s5678_s6 = sld [smem:[#allocation47_spill]]  ;;  %p5679_p2 = scmp.ge.s32.totalorder %s4503_s2, 1 }
  0x4a   : > { %s649_s16 = scalar_lea.vmem [#allocation8], %s4692_s26  ;;  %s5613_s10 = scalar_lea.sflag [#allocation9], %s4682_s23 }
  0x4b   : > { %p4752_p5 = pnand %p5679_p2, %p776_p0  ;;  %s656_s1 = sshll.u32 %s649_s16, 4  ;;  %s4757_s1 = int_to_ptr.vmem [resolvable:$true] %s656_s1 }
  0x4d   : > { %s5680_s3 = scalar_select %p4752_p5, 1, 0 }
  0x4f   : > { %s4748_s9 = scalar_lea.hbm %s5678_s6, %s4688_s25  ;;  %5681 = sst [smem:[#allocation32_spill]] %s5680_s3 }
  0x50   : > { %s4189_s13 = scalar_lea.hbm %s4748_s9, 1024  ;;  %s4194_s7 = scalar_lea.hbm %s5678_s6, 2048 }
  0x51   : > { %p4190_p9 = scmp.ne.s32.totalorder %s4748_s9, %s4189_s13  ;;  %p4195_p1 = scmp.lt.u32.totalorder %s4748_s9, %s5678_s6 }
  0x52   : > { %p4196_p3 = scmp.lt.u32.totalorder %s4194_s7, %s4189_s13  ;;  %p4198_p8 = scmp.lt.u32.totalorder %s4189_s13, %s4748_s9 }
  0x53   : > { %p4192_p12 = pnand %p4190_p9, %p4715_p7 }
  0x54   : > { %p4197_p6 = por %p4196_p3, %p4195_p1 }
  0x55   : > { %p4193_p13 = pneg %p4192_p12 }
  0x56   : > { %p4199_p10 = por %p4198_p8, %p4197_p6 }
  0x58   : > { %p4200_p11 = pnand %p4199_p10, %p4193_p13 }
  0x5a   : > { %4203 = shalt.err (!%p4200_p11)
}
  0x5b   : > { %s4204_s16 = scalar_lea.vmem %s4757_s1, 1024  ;;  %s4508_s24 = smov [#allocation8]  }
  0x5c   : > { %p4205_p0 = scmp.ne.s32.totalorder %s4757_s1, %s4204_s16  ;;  %s4209_s11 = sshll.u32 %s4508_s24, 4  ;;  %s4210_s11 = int_to_ptr.vmem [resolvable:$false] %s4209_s11 }
  0x5d   : > { %s4211_s5 = scalar_lea.vmem %s4210_s11, 2048  ;;  %p4212_p12 = scmp.lt.s32.totalorder %s4757_s1, %s4210_s11 }
  0x5e   : > { %p4207_p2 = pnand %p4205_p0, %p4715_p7  ;;  %p4213_p5 = scmp.lt.s32.totalorder %s4211_s5, %s4204_s16 }
  0x60   : > { %p4208_p9 = pneg %p4207_p2  ;;  %p4214_p1 = por %p4213_p5, %p4212_p12 }
  0x62   : > { %p4215_p3 = pnand %p4214_p1, %p4208_p9 }
  0x64   : > { %4218 = shalt.err (!%p4215_p3)
}
  0x65   : > { %s5682_s17 = smov 4   ;;  %s5683_s13 = smov 64  }
  0x66   : > { %3892 = dma.hbm_to_vmem [thread:$0]  (!%p4702_p4), %s4748_s9, 1024, %s4757_s1, %s5613_s10, %s5683_s13, %s5683_s13, %s5682_s17  }
  0x67   : > { %s5684_s7 = sand.u32 1, %s4471_s29   ;;  %s5614_s24 = sshll.u32 %s4495_s21, 12 }
  0x68   : > { %s4788_s16 = sshll.u32 %s5684_s7, 8  ;;  %s5685_s12 = sld [smem:[#allocation53_spill]] }
  0x69   : > { %s715_s20 = scalar_lea.vmem [#allocation11], %s4788_s16  ;;  %s5619_s1 = scalar_lea.sflag [#allocation12], %s4682_s23 }
  0x6a   : > { %s722_s3 = sshll.u32 %s715_s20, 4  ;;  %s4799_s3 = int_to_ptr.vmem [resolvable:$true] %s722_s3 }
  0x6e   : > { %s4796_s6 = scalar_lea.hbm %s5685_s12, %s5614_s24  ;;  %s4224_s11 = scalar_lea.hbm %s5685_s12, 8192 }
  0x6f   : > { %s4219_s9 = scalar_lea.hbm %s4796_s6, 4096  ;;  %p4225_p8 = scmp.lt.u32.totalorder %s4796_s6, %s5685_s12 }
  0x70   : > { %p4220_p5 = scmp.ne.s32.totalorder %s4796_s6, %s4219_s9  ;;  %p4226_p10 = scmp.lt.u32.totalorder %s4224_s11, %s4219_s9 }
  0x71   : > { %p4228_p0 = scmp.lt.u32.totalorder %s4219_s9, %s4796_s6 }
  0x72   : > { %p4222_p13 = pnand %p4220_p5, %p4715_p7  ;;  %p4227_p11 = por %p4226_p10, %p4225_p8 }
  0x74   : > { %p4223_p6 = pneg %p4222_p13  ;;  %p4229_p2 = por %p4228_p0, %p4227_p11 }
  0x76   : > { %p4230_p9 = pnand %p4229_p2, %p4223_p6 }
  0x78   : > { %4233 = shalt.err (!%p4230_p9)
}
  0x79   : > { %s4234_s20 = scalar_lea.vmem %s4799_s3, 4096  ;;  %s4509_s10 = smov [#allocation11]  }
  0x7a   : > { %p4235_p12 = scmp.ne.s32.totalorder %s4799_s3, %s4234_s20  ;;  %s4239_s7 = sshll.u32 %s4509_s10, 4  ;;  %s4240_s7 = int_to_ptr.vmem [resolvable:$false] %s4239_s7 }
  0x7b   : > { %s4241_s24 = scalar_lea.vmem %s4240_s7, 8192  ;;  %p4242_p5 = scmp.lt.s32.totalorder %s4799_s3, %s4240_s7 }
  0x7c   : > { %p4237_p1 = pnand %p4235_p12, %p4715_p7  ;;  %p4243_p13 = scmp.lt.s32.totalorder %s4241_s24, %s4234_s20 }
  0x7e   : > { %p4238_p3 = pneg %p4237_p1  ;;  %p4244_p8 = por %p4243_p13, %p4242_p5 }
  0x80   : > { %p4245_p10 = pnand %p4244_p8, %p4238_p3 }
  0x82   : > { %4248 = shalt.err (!%p4245_p10)
}
  0x83   : > { %s4510_s9 = smov 256   ;;  %s4511_s11 = smov 16  }
  0x84   : > { %3898 = dma.hbm_to_vmem [thread:$0]  (!%p4702_p4), %s4796_s6, 4096, %s4799_s3, %s5619_s1, %s4510_s9, %s4510_s9, %s4511_s11  }
  0x85   : > { %s114_s5 = sadd.s32 1, %s4471_s29  ;;  %s5686_s20 = sshll.u32 %s4495_s21, 12 }
  0x86   : > { %s5687_s14 = sld [smem:[#allocation55_spill]]  ;;  %s743_s12 = scalar_lea.vmem [#allocation13], %s4788_s16 }
  0x87   : > { %s4834_s13 = sshll.u32 %s743_s12, 4  ;;  %s4837_s17 = sadd.s32 4294967295, %s4503_s2   ;;  %s4984_s13 = int_to_ptr.vmem [resolvable:$true] %s4834_s13 }
  0x88   : > { %s3410_s23 = sadd.s32 4294967294, %s4503_s2   ;;  %s52_s15 = sadd.s32 1, %s4495_s21 }
  0x89   : > { %s55_s6 = sadd.s32 1, %s4499_s22  ;;  %p53_p6 = scmp.ge.s32.totalorder %s52_s15, 2 }
  0x8a   : > { %s62_s3 = sadd.s32 1, %s4483_s19  ;;  %p69_p11 = scmp.ne.s32.totalorder %s4483_s19, %s4479_s0 }
  0x8b   : > { %p75_p0 = scmp.ne.s32.totalorder %s4479_s0, %s4475_s30  ;;  %s5771_s15 = smov (%p53_p6, %s52_s15), 0 }
  0x8c   : > { %s4831_s24 = scalar_lea.hbm %s5687_s14, %s5686_s20  ;;  %5688 = sst [smem:[#allocation33_spill]] %s5771_s15 }
  0x8d   : > { %s5773_s6 = smov (!%p53_p6, %s55_s6), %s4499_s22  ;;  %p5689_p2 = scmp.eq.s32.totalorder %s4503_s2, 0 }
  0x8e   : > { %p76_p12 = scmp.eq.s32.totalorder %s4837_s17, 0  ;;  %p57_p1 = scmp.ge.s32.totalorder %s5773_s6, 2 }
  0x8f   : > { %p4855_p9 = por %p5689_p2, %p69_p11  ;;  %s111_s16 = ssub.s32 %s4495_s21, %s5771_s15 }
  0x90   : > { %p4865_p3 = por %p76_p12, %p75_p0  ;;  %p112_p5 = scmp.eq.s32.totalorder %s111_s16, 0 }
  0x91   : > { %s5775_s6 = smov (%p57_p1, %s5773_s6), 0  ;;  %p127_p13 = scmp.ne.s32.totalorder %s4467_s28, %s4463_s27 }
  0x92   : > { %s5691_s9 = scalar_select %p4865_p3, 1, 0 }
  0x93   : > { %5692 = sst [smem:[#allocation34_spill]] %s5775_s6  ;;  %s59_s20 = ssub.s32 %s4499_s22, %s5775_s6 }
  0x94   : > { %s4872_s11 = scalar_select %p112_p5, %s4471_s29, %s114_s5  }
  0x95   : > { %p60_p8 = scmp.eq.s32.totalorder %s59_s20, 0  ;;  %p541_p10 = scmp.eq.s32.totalorder %s4837_s17, 3 }
  0x96   : > { %5693 = sst [smem:[#allocation35_spill]] %s4872_s11  ;;  %p4879_p6 = por %p127_p13, %p76_p12 }
  0x97   : > { %p547_p2 = scmp.eq.s32.totalorder %s3410_s23, 3  ;;  %p4889_p1 = por %p541_p10, %p69_p11 }
  0x98   : > { %s5694_s10 = scalar_select %p4879_p6, 1, 0 }
  0x99   : > { %s4884_s7 = scalar_select %p60_p8, %s4483_s19, %s62_s3  }
  0x9a   : > { %s5696_s16 = scalar_select %p4889_p1, 1, 0 }
  0x9b   : > { %5695 = sst [smem:[#allocation36_spill]] %s4884_s7  ;;  %p4896_p5 = por %p547_p2, %p75_p0 }
  0x9c   : > { %5697 = sst [smem:[#allocation37_spill]] %s5696_s16  ;;  %s567_s27 = sand.u32 1, %s4483_s19  }
  0x9d   : > { %s5698_s5 = scalar_select %p4896_p5, 1, 0 }
  0x9e   : > { %s3414_s20 = sshll.u32 %s4499_s22, 7  ;;  %s3413_s1 = sshll.u32 %s567_s27, 3 }
  0x9f   : > { %5699 = sst [smem:[#allocation38_spill]] %s5698_s5  ;;  %s5700_s21 = sld [smem:[#allocation41_spill]] }
  0xa0   : > { %s571_s23 = scalar_lea.vmem [#allocation2], %s3413_s1  ;;  %p5702_p11 = scmp.lt.s32.totalorder %s4503_s2, 4 }
  0xa1   : > { %s578_s3 = sshll.u32 %s571_s23, 4  ;;  %s5704_s4 = sld [smem:[#allocation45_spill]]  ;;  %s4915_s3 = int_to_ptr.vmem [resolvable:$true] %s578_s3 }
  0xa2   : > { %p4911_p0 = pnand %p5702_p11, %p4855_p9  ;;  %s568_s6 = scalar_lea.sflag [#allocation3], %s567_s27 }
  0xa4   : > { %p4251_p13 = pneg %p4911_p0 }
  0xa5   : > { %s5701_s11 = smov %s5700_s21  ;;  %s4905_s29 = scalar_lea.hbm %s5700_s21, %s3414_s20 }
  0xa6   : > { %s4249_s20 = scalar_lea.hbm %s4905_s29, 128  ;;  %s4254_s23 = scalar_lea.hbm %s5701_s11, 256 }
  0xa7   : > { %s4921_s21 = scalar_lea.hbm %s5704_s4, %s4688_s25  ;;  %p4250_p12 = scmp.ne.s32.totalorder %s4905_s29, %s4249_s20 }
  0xa8   : > { %p4255_p10 = scmp.lt.u32.totalorder %s4905_s29, %s5701_s11  ;;  %p4256_p2 = scmp.lt.u32.totalorder %s4254_s23, %s4249_s20 }
  0xa9   : > { %p4252_p9 = pnand %p4251_p13, %p4250_p12  ;;  %p4258_p5 = scmp.lt.u32.totalorder %s4249_s20, %s4905_s29 }
  0xaa   : > { %p4257_p11 = por %p4256_p2, %p4255_p10 }
  0xab   : > { %p4253_p8 = pneg %p4252_p9 }
  0xac   : > { %p4259_p1 = por %p4258_p5, %p4257_p11 }
  0xae   : > { %p4260_p6 = pnand %p4259_p1, %p4253_p8 }
  0xb0   : > { %4263 = shalt.err (!%p4260_p6)
}
  0xb1   : > { %s4264_s22 = scalar_lea.vmem %s4915_s3, 128  ;;  %s4512_s27 = smov [#allocation2]  }
  0xb2   : > { %p4265_p12 = scmp.ne.s32.totalorder %s4915_s3, %s4264_s22  ;;  %s4269_s15 = sshll.u32 %s4512_s27, 4  ;;  %s4270_s15 = int_to_ptr.vmem [resolvable:$false] %s4269_s15 }
  0xb3   : > { %s4271_s19 = scalar_lea.vmem %s4270_s15, 256  ;;  %p4272_p4 = scmp.lt.s32.totalorder %s4915_s3, %s4270_s15 }
  0xb4   : > { %p4267_p9 = pnand %p4265_p12, %p4251_p13  ;;  %p4273_p10 = scmp.lt.s32.totalorder %s4271_s19, %s4264_s22 }
  0xb6   : > { %p4268_p3 = pneg %p4267_p9  ;;  %p4274_p2 = por %p4273_p10, %p4272_p4 }
  0xb8   : > { %p4275_p5 = pnand %p4274_p2, %p4268_p3 }
  0xba   : > { %4278 = shalt.err (!%p4275_p5)
}
  0xbb   : > { %3883 = dma.hbm_to_vmem [thread:$0]  (!%p4911_p0), %s4905_s29, 128, %s4915_s3, %s568_s6  }
  0xbc   : > { %s622_s5 = scalar_lea.vmem [#allocation7], %s4692_s26  ;;  %s5705_s8 = sld [smem:[#allocation49_spill]] }
  0xbd   : > { %s629_s20 = sshll.u32 %s622_s5, 4  ;;  %s4279_s7 = scalar_lea.hbm %s4921_s21, 1024  ;;  %s4949_s20 = int_to_ptr.vmem [resolvable:$true] %s629_s20 }
  0xbe   : > { %p4280_p4 = scmp.ne.s32.totalorder %s4921_s21, %s4279_s7  ;;  %s4284_s15 = scalar_lea.hbm %s5704_s4, 2048 }
  0xbf   : > { %p4285_p1 = scmp.lt.u32.totalorder %s4921_s21, %s5704_s4  ;;  %p4286_p0 = scmp.lt.u32.totalorder %s4284_s15, %s4279_s7 }
  0xc0   : > { %p4282_p3 = pnand %p4280_p4, %p4715_p7  ;;  %p4288_p8 = scmp.lt.u32.totalorder %s4279_s7, %s4921_s21 }
  0xc1   : > { %p4287_p13 = por %p4286_p0, %p4285_p1 }
  0xc2   : > { %s4955_s23 = scalar_lea.hbm %s5705_s8, %s4688_s25  ;;  %p4283_p6 = pneg %p4282_p3 }
  0xc3   : > { %p4289_p11 = por %p4288_p8, %p4287_p13 }
  0xc5   : > { %p4290_p12 = pnand %p4289_p11, %p4283_p6 }
  0xc7   : > { %4293 = shalt.err (!%p4290_p12)
}
  0xc8   : > { %s4294_s25 = scalar_lea.vmem %s4949_s20, 1024  ;;  %s4513_s3 = smov [#allocation7]  }
  0xc9   : > { %p4295_p9 = scmp.ne.s32.totalorder %s4949_s20, %s4294_s25  ;;  %s4299_s6 = sshll.u32 %s4513_s3, 4  ;;  %s4300_s6 = int_to_ptr.vmem [resolvable:$false] %s4299_s6 }
  0xca   : > { %s4301_s5 = scalar_lea.vmem %s4300_s6, 2048  ;;  %p4302_p5 = scmp.lt.s32.totalorder %s4949_s20, %s4300_s6 }
  0xcb   : > { %p4297_p10 = pnand %p4295_p9, %p4715_p7  ;;  %p4303_p4 = scmp.lt.s32.totalorder %s4301_s5, %s4294_s25 }
  0xcd   : > { %p4298_p2 = pneg %p4297_p10  ;;  %p4304_p3 = por %p4303_p4, %p4302_p5 }
  0xcf   : > { %p4305_p1 = pnand %p4304_p3, %p4298_p2 }
  0xd1   : > { %4308 = shalt.err (!%p4305_p1)
}
  0xd2   : > { %s5706_s1 = sld [smem:[#allocation31_spill]]  ;;  %s5708_s12 = smov 4  }
  0xd3   : > { %s5709_s7 = smov 64   ;;  %s5710_s22 = sld [smem:[#allocation30_spill]] }
  0xd4   : > { %s676_s15 = scalar_lea.vmem [#allocation10], %s4692_s26  ;;  %s4309_s29 = scalar_lea.hbm %s4955_s23, 1024 }
  0xd5   : > { %s683_s19 = sshll.u32 %s676_s15, 4  ;;  %p4310_p0 = scmp.ne.s32.totalorder %s4955_s23, %s4309_s29  ;;  %s4987_s19 = int_to_ptr.vmem [resolvable:$true] %s683_s19 }
  0xd6   : > { %s4314_s6 = scalar_lea.hbm %s5705_s8, 2048  ;;  %p4315_p11 = scmp.lt.u32.totalorder %s4955_s23, %s5705_s8 }
  0xd7   : > { %p4312_p13 = pnand %p4310_p0, %p4715_p7  ;;  %p4316_p12 = scmp.lt.u32.totalorder %s4314_s6, %s4309_s29 }
  0xd8   : > { %p5707_p6 = scmp.ne.s32.totalorder %s5706_s1, 0  ;;  %p4318_p10 = scmp.lt.u32.totalorder %s4309_s29, %s4955_s23 }
  0xd9   : > { %s5711_s27 = scalar_lea.sflag [#allocation6], %s5710_s22  ;;  %p4313_p8 = pneg %p4312_p13 }
  0xda   : > { %3889 = dma.hbm_to_vmem [thread:$0]  (!%p5707_p6), %s4921_s21, 1024, %s4949_s20, %s5711_s27, %s5709_s7, %s5709_s7, %s5708_s12  }
  0xdb   : > { %p4317_p9 = por %p4316_p12, %p4315_p11 }
  0xdd   : > { %p4319_p2 = por %p4318_p10, %p4317_p9 }
  0xdf   : > { %p4320_p5 = pnand %p4319_p2, %p4313_p8 }
  0xe1   : > { %4323 = shalt.err (!%p4320_p5)
}
  0xe2   : > { %s4324_s26 = scalar_lea.vmem %s4987_s19, 1024  ;;  %s4514_s21 = smov [#allocation10]  }
  0xe3   : > { %p4325_p4 = scmp.ne.s32.totalorder %s4987_s19, %s4324_s26  ;;  %s4329_s20 = sshll.u32 %s4514_s21, 4  ;;  %s4330_s20 = int_to_ptr.vmem [resolvable:$false] %s4329_s20 }
  0xe4   : > { %s4331_s4 = scalar_lea.vmem %s4330_s20, 2048  ;;  %p4332_p0 = scmp.lt.s32.totalorder %s4987_s19, %s4330_s20 }
  0xe5   : > { %p4327_p3 = pnand %p4325_p4, %p4715_p7  ;;  %p4333_p13 = scmp.lt.s32.totalorder %s4331_s4, %s4324_s26 }
  0xe7   : > { %p4328_p1 = pneg %p4327_p3  ;;  %p4334_p11 = por %p4333_p13, %p4332_p0 }
  0xe9   : > { %p4335_p12 = pnand %p4334_p11, %p4328_p1 }
  0xeb   : > { %4338 = shalt.err (!%p4335_p12)
}
  0xec   : > { %s5712_s27 = scalar_lea.sflag [#allocation9], %s5710_s22  ;;  %s4339_s15 = scalar_lea.hbm %s4831_s24, 4096 }
  0xed   : > { %3895 = dma.hbm_to_vmem [thread:$0]  (!%p5707_p6), %s4955_s23, 1024, %s4987_s19, %s5712_s27, %s5709_s7, %s5709_s7, %s5708_s12  }
  0xee   : > { %p4340_p8 = scmp.ne.s32.totalorder %s4831_s24, %s4339_s15  ;;  %s4344_s3 = scalar_lea.hbm %s5687_s14, 8192 }
  0xef   : > { %p4345_p2 = scmp.lt.u32.totalorder %s4831_s24, %s5687_s14  ;;  %p4346_p5 = scmp.lt.u32.totalorder %s4344_s3, %s4339_s15 }
  0xf0   : > { %p4342_p9 = pnand %p4340_p8, %p4715_p7  ;;  %p4348_p3 = scmp.lt.u32.totalorder %s4339_s15, %s4831_s24 }
  0xf1   : > { %p4347_p4 = por %p4346_p5, %p4345_p2 }
  0xf2   : > { %p4343_p10 = pneg %p4342_p9 }
  0xf3   : > { %p4349_p1 = por %p4348_p3, %p4347_p4 }
  0xf5   : > { %p4350_p0 = pnand %p4349_p1, %p4343_p10 }
  0xf7   : > { %4353 = shalt.err (!%p4350_p0)
}
  0xf8   : > { %s4354_s23 = scalar_lea.vmem %s4984_s13, 4096  ;;  %s4515_s19 = smov [#allocation13]  }
  0xf9   : > { %p4355_p13 = scmp.ne.s32.totalorder %s4984_s13, %s4354_s23  ;;  %s4359_s26 = sshll.u32 %s4515_s19, 4  ;;  %s4360_s26 = int_to_ptr.vmem [resolvable:$false] %s4359_s26 }
  0xfa   : > { %s4361_s21 = scalar_lea.vmem %s4360_s26, 8192  ;;  %p4362_p8 = scmp.lt.s32.totalorder %s4984_s13, %s4360_s26 }
  0xfb   : > { %p4357_p11 = pnand %p4355_p13, %p4715_p7  ;;  %p4363_p9 = scmp.lt.s32.totalorder %s4361_s21, %s4354_s23 }
  0xfd   : > { %p4358_p12 = pneg %p4357_p11  ;;  %p4364_p2 = por %p4363_p9, %p4362_p8 }
  0xff   : > { %p4365_p5 = pnand %p4364_p2, %p4358_p12 }
 0x101   : > { %4368 = shalt.err (!%p4365_p5)
}
 0x102   : > { %s5713_s20 = scalar_lea.sflag [#allocation12], %s5710_s22  ;;  %s5714_s18 = sld [smem:[#allocation32_spill]] }
 0x103   : > { %3901 = dma.hbm_to_vmem [thread:$0]  (!%p5707_p6), %s4831_s24, 4096, %s4984_s13, %s5713_s20, %s5709_s7, %s5709_s7, %s5708_s12  }
 0x108   : > { %p5715_p7 = scmp.ne.s32.totalorder %s5714_s18, 0 }
 0x10a   : > { %780 = sbr.rel (%p5715_p7) target bundleno = 4375 (0x1117), region = 92 }
 0x111   : > { %s5044_s4 = sand.u32 1, %s4479_s0   ;;  %p5716_p10 = scmp.ne.s32.totalorder %s5691_s9, 0 }
 0x112   : > { %s5632_s27 = sshll.u32 %s5044_s4, 3  ;;  %s783_s1 = scalar_lea.sflag [#allocation3], %s5044_s4 }
 0x113   : > { %s5050_s15 = scalar_lea.vmem [#allocation2], %s5632_s27 }
 0x114   : > { %4442 = dma.done.wait (%p5716_p10), %s783_s1, 128  }
 0x115   : > { %4444 = vsyncadd (%p5716_p10), %s783_s1, 4294967168  ;;  %s791_s13 = sand.u32 1, %s4837_s17   ;;  %s793_s24 = sand.u32 1, %s4467_s28  }
 0x116   : > { %s3435_s12 = sshll.u32 %s793_s24, 6  ;;  %s792_s7 = scalar_lea.sflag [#allocation6], %s791_s13 }
 0x117   : > { %s5058_s22 = scalar_lea.vmem [#allocation5], %s3435_s12  ;;  %p5717_p6 = scmp.ne.s32.totalorder %s5694_s10, 0 }
 0x119   : > { %4446 = dma.done.wait (%p5717_p6), %s792_s7, 2048  }
 0x11a   : > { %4448 = vsyncadd (%p5717_p6), %s792_s7, 4294965248  ;;  %s5064_s29 = scalar_lea.vmem [#allocation7], %s3435_s12  ;;  %s810_s25 = scalar_lea.sflag [#allocation9], %s791_s13 }
 0x11b   : > { %s5066_s9 = scalar_lea.vmem [#allocation8], %s3435_s12 }
 0x11c   : > { %4450 = dma.done.wait (%p5717_p6), %s810_s25, 2048  }
 0x11d   : > { %4452 = vsyncadd (%p5717_p6), %s810_s25, 4294965248  ;;  %s3439_s17 = sshll.u32 %s793_s24, 8  ;;  %s5072_s3 = scalar_lea.vmem [#allocation10], %s3435_s12 }
 0x11e   : > { %5718 = sst [smem:[#allocation39_spill]] %s5072_s3  ;;  %s828_s6 = scalar_lea.sflag [#allocation12], %s791_s13 }
 0x11f   : > { %s5074_s5 = scalar_lea.vmem [#allocation11], %s3439_s17 }
 0x120   : > { %5719 = sst [smem:[#allocation40_spill]] %s5074_s5 }
 0x121   : > { %4454 = dma.done.wait (%p5717_p6), %s828_s6, 8192  }
 0x122   : > { %4456 = vsyncadd (%p5717_p6), %s828_s6, 4294959104  ;;  %s5720_s23 = sld [smem:[#allocation26_spill]]  ;;  %s5721_s19 = sld [smem:[#allocation25_spill]] }
 0x123   : > { %s5725_s8 = sld [smem:[#allocation48_spill]]  ;;  %s5728_s1 = sld [smem:[#allocation52_spill]] }
 0x124   : > { %s5729_s25 = sld [smem:[#allocation56_spill]]  ;;  %s5731_s0 = sld [smem:[#allocation57_spill]] }
 0x125   : > { %s5732_s5 = sld [smem:[#allocation58_spill]]  ;;  %s5134_s3 = scalar_lea.vmem [#allocation13], %s3439_s17 }
 0x126   : > { %s5733_s10 = sshll.u32 %s5044_s4, 3 }
 0x128   : > { %p957_p4 = scmp.lt.s32.totalorder %s5720_s23, 1  ;;  %p960_p3 = scmp.lt.s32.totalorder %s5721_s19, 1 }
 0x129   : > { %p3443_p1 = scmp.ne.s32.totalorder %s5721_s19, 0 }
 0x12a   : > { %s5777_s23 = smov (!%p957_p4, %s5720_s23), 1  ;;  %v996_v0 = vld [vmem:[%s5050_s15] sm:$0xff] (!%p3443_p1) }
 0x12b   : > { %s5086_s26 = scalar_select %p960_p3, %s5721_s19, 1 }
 0x12d   : > { %s968_s11 = scalar_lea.vmem %s5725_s8, %s5086_s26  ;;  %s977_s13 = scalar_lea.vmem %s5728_s1, %s5086_s26 }
 0x12e   : > { %s3442_s24 = sshll.u32 %s5086_s26, 2  ;;  %s984_s6 = scalar_lea.vmem %s5729_s25, %s5086_s26 }
 0x12f   : > { %s5730_s8 = sld [smem:[#allocation54_spill]]  ;;  %s987_s30 = scalar_lea.vmem %s5731_s0, %s5086_s26 }
 0x130   : > { %s990_s18 = scalar_lea.vmem %s5732_s5, %s5086_s26  ;;  %s5138_s1 = scalar_lea.vmem [#allocation14], %s5733_s10 }
 0x131   : > { %995 = sbr.rel (%p3443_p1) target bundleno = 312 (0x138), region = 124  ;;  %997 = vst [vmem:[%s5138_s1] sm:$0xff] (!%p3443_p1), %v996_v0 }
 0x135   : > { %s5124_s20 = scalar_lea.vmem %s5730_s8, %s3442_s24 }
 0x138 PF: > { %v4010_v1 = vld [vmem:[%s5064_s29] sm:$0xff]   ;;  %v4516_v2 = vmov 0.0   ;;  %v4012_v4 = vld [vmem:[%s5064_s29 + $0x8] sm:$0xff]   ;;  %vm4517_vm0 = vmmov 0   ;;  %v4014_v6 = vld [vmem:[%s5064_s29 + $0x10] sm:$0xff]   ;;  %s5736_s12 = sld [smem:[#allocation44_spill]] }
 0x139   : > { %3708 = vmatprep.subr.bf16.mxu1 %v4516_v2  ;;  %3688 = vmatprep.subr.bf16.mxu0 %v4516_v2  ;;  %v4011_v3 = vld [vmem:[%s5058_s22] sm:$0xff]   ;;  %v4013_v5 = vld [vmem:[%s5058_s22 + $0x8] sm:$0xff]   ;;  %v4015_v7 = vld [vmem:[%s5058_s22 + $0x10] sm:$0xff]   ;;  %vm1344_vm1 = vcmask 130048   ;;  %s4518_s7 = smov 112   ;;  %s5738_s8 = sld [smem:[#allocation42_spill]] }
 0x13a   : > { %3709 = vmatpush3.bf16.msra.mxu1 %v4010_v1  ;;  %3724 = vmatprep.mubr.msk.bf16.mxu1 %vm4517_vm0, %v4516_v2  ;;  %v4016_v8 = vld [vmem:[%s5064_s29 + $0x18] sm:$0xff]   ;;  %v4018_v10 = vld [vmem:[%s5064_s29 + $0x20] sm:$0xff]   ;;  %v4020_v12 = vld [vmem:[%s5064_s29 + $0x28] sm:$0xff]   ;;  %vm1391_vm2 = vcmask 64512   ;;  %vm1407_vm3 = vcmask 1043456   ;;  %s4520_s0 = smov 64  }
 0x13b   : > { %3689 = vmatpush3.bf16.msra.mxu0 %v4011_v3  ;;  %3710 = vmatprep.subr.bf16.mxu1 %v4516_v2  ;;  %v4017_v9 = vld [vmem:[%s5058_s22 + $0x18] sm:$0xff]   ;;  %v4019_v11 = vld [vmem:[%s5058_s22 + $0x20] sm:$0xff]   ;;  %v4021_v13 = vld [vmem:[%s5058_s22 + $0x28] sm:$0xff]   ;;  %s4521_s2 = smov 16   ;;  %s4522_s16 = smov 80   ;;  %vm2253_vm4 = vcmask 261120  }
 0x13c   : > { %3690 = vmatprep.subr.bf16.mxu0 %v4516_v2  ;;  %3704 = vmatprep.mubr.msk.bf16.mxu0 %vm4517_vm0, %v4516_v2  ;;  %v4022_v14 = vld [vmem:[%s5064_s29 + $0x30] sm:$0xff]   ;;  %v4024_v16 = vld [vmem:[%s5064_s29 + $0x38] sm:$0xff]   ;;  %v998_v17 = vld [vmem:[%s5138_s1] sm:$0xff]  ;;  %s4523_s5 = smov 48   ;;  %s4524_s10 = smov 32   ;;  %vm2255_vm5 = vcmask 392192  }
 0x13d   : > { %v4023_v15 = vld [vmem:[%s5058_s22 + $0x30] sm:$0xff]   ;;  %v4025_v18 = vld [vmem:[%s5058_s22 + $0x38] sm:$0xff]   ;;  %v999_v19 = vpack.c.bf16 %v998_v17, %v998_v17  ;;  %s5734_s22 = sld [smem:[#allocation46_spill]]  ;;  %v4026_v36 = vld [vmem:[%s5066_s9] sm:$0xff]   ;;  %s5741_s27 = sld [smem:[#allocation39_spill]]  ;;  %vm2257_vm6 = vcmask 523264  }
 0x13e   : > { %3711 = vmatpush3.bf16.msra.mxu1 %v4012_v4  ;;  %s5737_s24 = scalar_lea.vmem %s5736_s12, %s5086_s26  ;;  %v4027_v37 = vld [vmem:[%s5066_s9 + $0x8] sm:$0xff]   ;;  %v4028_v38 = vld [vmem:[%s5066_s9 + $0x10] sm:$0xff]   ;;  %v4029_v39 = vld [vmem:[%s5066_s9 + $0x18] sm:$0xff]   ;;  %vm2259_vm7 = vcmask 654336   ;;  %vm2261_vm8 = vcmask 785408   ;;  %vm2263_vm9 = vcmask 916480  }
 0x13f   : > { %3691 = vmatpush3.bf16.msra.mxu0 %v4013_v5  ;;  %3712 = vmatprep.subr.bf16.mxu1 %v4516_v2  ;;  %v3444_v21 = vld [vmem:[%s5737_s24] ss:$0 sm:$0xff]  ;;  %v4030_v40 = vld [vmem:[%s5066_s9 + $0x20] sm:$0xff]   ;;  %v4031_v41 = vld [vmem:[%s5066_s9 + $0x28] sm:$0xff]   ;;  %s5739_s14 = scalar_lea.vmem %s5738_s8, %s5777_s23  ;;  %s5742_s15 = sld [smem:[#allocation40_spill]] }
 0x140   : > { %3692 = vmatprep.subr.bf16.mxu0 %v4516_v2  ;;  %v4032_v42 = vld [vmem:[%s5066_s9 + $0x30] sm:$0xff]   ;;  %v4033_v43 = vld [vmem:[%s5066_s9 + $0x38] sm:$0xff]   ;;  %s5743_s17 = sld [smem:[#allocation50_spill]]  ;;  %s5749_s9 = sld [smem:[#allocation26_spill]] }
 0x141   : > { %v5234_v44 = vld [vmem:[%s5739_s14] ss:$0 sm:$0xff] }
 0x142   : > { %3713 = vmatpush3.bf16.msra.mxu1 %v4014_v6  ;;  %v3462_v60 = vld [vmem:[%s968_s11] ss:$0 sm:$0xff]  ;;  %s4519_s11 = smov 96  }
 0x143   : > { %3693 = vmatpush3.bf16.msra.mxu0 %v4015_v7  ;;  %3714 = vmatprep.subr.bf16.mxu1 %v4516_v2  ;;  %s5735_s29 = scalar_lea.vmem %s5734_s22, %s5086_s26  ;;  %s5753_s22 = sld [smem:[#allocation59_spill]] }
 0x144   : > { %3694 = vmatprep.subr.bf16.mxu0 %v4516_v2  ;;  %v3453_v20 = vld [vmem:[%s5735_s29] ss:$0 sm:$0xff] }
 0x146   : > { %3715 = vmatpush3.bf16.msra.mxu1 %v4016_v8  ;;  %s5744_s19 = scalar_lea.vmem %s5743_s17, %s5086_s26 }
 0x147   : > { %3695 = vmatpush3.bf16.msra.mxu0 %v4017_v9  ;;  %3716 = vmatprep.subr.bf16.mxu1 %v4516_v2 }
 0x148   : > { %3696 = vmatprep.subr.bf16.mxu0 %v4516_v2 }
 0x149   : > { %s5754_s17 = smov %s5753_s22 }
 0x14a   : > { %3717 = vmatpush3.bf16.msra.mxu1 %v4018_v10 }
 0x14b   : > { %3697 = vmatpush3.bf16.msra.mxu0 %v4019_v11  ;;  %3718 = vmatprep.subr.bf16.mxu1 %v4516_v2 }
 0x14c   : > { %3698 = vmatprep.subr.bf16.mxu0 %v4516_v2 }
 0x14e   : > { %3719 = vmatpush3.bf16.msra.mxu1 %v4020_v12 }
 0x14f   : > { %3699 = vmatpush3.bf16.msra.mxu0 %v4021_v13  ;;  %3720 = vmatprep.subr.bf16.mxu1 %v4516_v2 }
 0x150   : > { %3700 = vmatprep.subr.bf16.mxu0 %v4516_v2 }
 0x152   : > { %3721 = vmatpush3.bf16.msra.mxu1 %v4022_v14 }
 0x153   : > { %3701 = vmatpush3.bf16.msra.mxu0 %v4023_v15  ;;  %3722 = vmatprep.subr.bf16.mxu1 %v4516_v2 }
 0x154   : > { %3702 = vmatprep.subr.bf16.mxu0 %v4516_v2 }
 0x156   : > { %3723 = vmatpush3.bf16.msra.mxu1 %v4024_v16 }
 0x157   : > { %3703 = vmatpush3.bf16.msra.mxu0 %v4025_v18  ;;  %3748 = vmatprep.subr.bf16.mxu1 %v4516_v2 }
 0x158   : > { %3728 = vmatprep.subr.bf16.mxu0 %v4516_v2 }
 0x159   : > { %3725 = vmatmul.mubr.bf16.vlgmr.msra.gmra.mrb[0].mxu1 %v999_v19 }
 0x15a   : > { %3705 = vmatmul.mubr.bf16.vlgmr.msra.gmra.mrb[0].mxu0 %v999_v19  ;;  %3750 = vmatprep.mubr.msk.bf16.mxu1 %vm4517_vm0, %v4516_v2 }
 0x15b   : > { %3744 = vmatprep.mubr.msk.bf16.mxu0 %vm4517_vm0, %v4516_v2  ;;  %3729 = vmatpush3.bf16.msra.mxu0 %v4026_v36 }
 0x15c   : > { %3730 = vmatprep.subr.bf16.mxu0 %v4516_v2 }
 0x15f   : > { %3731 = vmatpush3.bf16.msra.mxu0 %v4027_v37 }
 0x160   : > { %3732 = vmatprep.subr.bf16.mxu0 %v4516_v2 }
 0x163   : > { %3733 = vmatpush3.bf16.msra.mxu0 %v4028_v38 }
 0x164   : > { %3734 = vmatprep.subr.bf16.mxu0 %v4516_v2 }
 0x167   : > { %3735 = vmatpush3.bf16.msra.mxu0 %v4029_v39 }
 0x168   : > { %3736 = vmatprep.subr.bf16.mxu0 %v4516_v2 }
 0x16b   : > { %3737 = vmatpush3.bf16.msra.mxu0 %v4030_v40 }
 0x16c   : > { %3738 = vmatprep.subr.bf16.mxu0 %v4516_v2 }
 0x16f   : > { %3739 = vmatpush3.bf16.msra.mxu0 %v4031_v41 }
 0x170   : > { %3740 = vmatprep.subr.bf16.mxu0 %v4516_v2 }
 0x173   : > { %3741 = vmatpush3.bf16.msra.mxu0 %v4032_v42 }
 0x174   : > { %3742 = vmatprep.subr.bf16.mxu0 %v4516_v2 }
 0x177   : > { %3743 = vmatpush3.bf16.msra.mxu0 %v4033_v43 }
 0x178   : > { %3796 = vmatprep.subr.bf16.mxu0 %v4516_v2 }
 0x17a   : > { %3745 = vmatmul.mubr.bf16.vlgmr.msra.gmra.mrb[4].mxu0 %v999_v19 }
 0x17b   : > { %3798 = vmatprep.mubr.msk.bf16.mxu0 %vm4517_vm0, %v4516_v2 }
 0x22c   : > { %v1216_v22 = vpop.f32.mrb[0].mxu1 }
 0x22d   : > { %v1217_v23 = vadd.f32 %v3453_v20, %v1216_v22  ;;  %v3726_v24 = vpop.f32.mrb[1].mxu1  ;;  %v1105_v25 = vpop.f32.mrb[0].mxu0 }
 0x22e   : > { %v1219_v26 = vpop.f32.mrb[2].mxu1  ;;  %v1106_v27 = vadd.f32 %v3444_v21, %v1105_v25  ;;  %v3706_v28 = vpop.f32.mrb[1].mxu0 }
 0x22f   : > { %v5196_v29 = vpack.c.bf16 %v1217_v23, %v1217_v23  ;;  %v3727_v30 = vpop.f32.mrb[3].mxu1  ;;  %v1108_v31 = vpop.f32.mrb[2].mxu0 }
 0x230   : > { %v1333_v32 = vmul.f32 0.088388346, %v1106_v27  ;;  %v3707_v33 = vpop.f32.mrb[3].mxu0 }
 0x231   : > { %1455 = vrot.lane.b32.xlu1 %v5196_v29, %s4518_s7  ;;  %v1349_v34 = vsel %vm1344_vm1, %v5196_v29, 0 }
 0x232   : > { %v5202_v35 = vpack.c.bf16 %v1333_v32, %v1333_v32  ;;  %3749 = vmatpush3.bf16.xpose.msra.mxu1 %v1349_v34 }
 0x233   : > { %3754 = vmatprep.subr.bf16.mxu1 %v4516_v2 }
 0x235   : > { %1452 = vrot.lane.b32.xlu1 %v5202_v35, %s4518_s7 }
 0x239   : > { %3751 = vmatmul.mubr.msk.bf16.vlgmr.msra.gmra.mrb[4].mxu1 %vm1344_vm1, %v5202_v35 }
 0x23a   : > { %3756 = vmatprep.mubr.msk.bf16.mxu1 %vm4517_vm0, %v4516_v2 }
 0x24d   : > { %v1327_v51 = vpop.f32.mrb[4].mxu0 }
 0x24e   : > { %v3746_v52 = vpop.f32.mrb[5].mxu0  ;;  %v1328_v61 = vadd.f32 %v3462_v60, %v1327_v51 }
 0x24f   : > { %v1330_v53 = vpop.f32.mrb[6].mxu0 }
 0x250   : > { %v3747_v54 = vpop.f32.mrb[7].mxu0  ;;  %v5244_v62 = vpack.c.bf16 %v1328_v61, %v1328_v61 }
 0x252   : > { %v1409_v63 = vsel %vm1407_vm3, %v5244_v62, 0 }
 0x253   : > { %3755 = vmatpush3.bf16.msra.mxu1 %v1409_v63 }
 0x254   : > { %3760 = vmatprep.subr.bf16.mxu1 %v4516_v2 }
 0x2a3   : > { %v1456_v4 = vpop.permute.xlu1 %1455 }
 0x2a4   : > { %v1461_v6 = vsel %vm1344_vm1, %v1456_v4, 0 }
 0x2a7   : > { %v1453_v7 = vpop.permute.xlu1 %1452 }
 0x30c   : > { %v1385_v45 = vpop.f32.mrb[4].mxu1 }
 0x30d   : > { %v1386_v46 = vadd.f32 %v5234_v44, %v1385_v45  ;;  %v3752_v47 = vpop.f32.mrb[5].mxu1 }
 0x30e   : > { %v1388_v48 = vpop.f32.mrb[6].mxu1 }
 0x30f   : > { %v3753_v49 = vpop.f32.mrb[7].mxu1  ;;  %v1392_v50 = vsel %vm1391_vm2, %v1386_v46, -inf }
 0x310   : > { %1393 = vmax.xlane.f32.xlu0 %v1392_v50 }
 0x39d   : > { %v1394_v55 = vpop.xlane.xlu0 %1393 }
 0x39e   : > { %v1395_v56 = vsub.f32 %v1386_v46, %v1394_v55 }
 0x3a0   : > { %v1396_v57 = vmul.f32 1.442695, %v1395_v56 }
 0x3a2   : > { %4122 = vpow2.f32 %v1396_v57 }
 0x3ac   : > { %v4123_v58 = vpop.eup %4122 }
 0x3ad   : > { %v1398_v59 = vsel %vm1391_vm2, %v4123_v58, 0.0 }
 0x3ae   : > { %1399 = vadd.xlane.f32.xlu0 %v1398_v59 }
 0x43b   : > { %v1400_v0 = vpop.xlane.xlu0 %1399 }
 0x43c   : > { %4124 = vrcp.f32 %v1400_v0 }
 0x446   : > { %v4125_v1 = vpop.eup %4124 }
 0x447   : > { %v1402_v3 = vmul.f32 %v4125_v1, %v4123_v58 }
 0x449   : > { %v1403_v5 = vpack.c.bf16 %v1402_v3, %v1402_v3 }
 0x44b   : > { %3757 = vmatmul.mubr.msk.bf16.vlgmr.msra.gmra.mrb[8].mxu1 %vm1391_vm2, %v1403_v5 }
 0x44c   : > { %3761 = vmatpush3.bf16.xpose.msra.mxu1 %v1461_v6  ;;  %3762 = vmatprep.mubr.msk.bf16.mxu1 %vm4517_vm0, %v4516_v2 }
 0x44d   : > { %3766 = vmatprep.subr.bf16.mxu1 %v4516_v2 }
 0x453   : > { %3763 = vmatmul.mubr.msk.bf16.vlgmr.msra.gmra.mrb[12].mxu1 %vm1344_vm1, %v1453_v7 }
 0x454   : > { %3768 = vmatprep.mubr.msk.bf16.mxu1 %vm4517_vm0, %v4516_v2 }
 0x51e   : > { %v5257_v8 = vpop.f32.mrb[8].mxu1 }
 0x51f   : > { %v3758_v9 = vpop.f32.mrb[9].mxu1 }
 0x520   : > { %v1448_v10 = vpop.f32.mrb[10].mxu1 }
 0x521   : > { %v3759_v11 = vpop.f32.mrb[11].mxu1 }
 0x526   : > { %v1497_v12 = vpop.f32.mrb[12].mxu1 }
 0x527   : > { %v1498_v13 = vadd.f32 %v5234_v44, %v1497_v12  ;;  %v3764_v14 = vpop.f32.mrb[13].mxu1 }
 0x528   : > { %v1500_v15 = vpop.f32.mrb[14].mxu1 }
 0x529   : > { %v3765_v16 = vpop.f32.mrb[15].mxu1  ;;  %v1503_v17 = vsel %vm1391_vm2, %v1498_v13, -inf }
 0x52a   : > { %1504 = vmax.xlane.f32.xlu0 %v1503_v17 }
 0x540   : > { %1516 = vrot.lane.b32.xlu0 %v5244_v62, %s4518_s7 }
 0x544   : > { %1566 = vrot.lane.b32.xlu0 %v5196_v29, %s4519_s11 }
 0x548   : > { %1564 = vrot.lane.b32.xlu0 %v5202_v35, %s4519_s11 }
 0x5b7   : > { %v1505_v18 = vpop.xlane.xlu0 %1504 }
 0x5b8   : > { %v1506_v19 = vsub.f32 %v1498_v13, %v1505_v18 }
 0x5ba   : > { %v1507_v20 = vmul.f32 1.442695, %v1506_v19 }
 0x5bb   : > { %v1517_v21 = vpop.permute.xlu0 %1516 }
 0x5bc   : > { %4126 = vpow2.f32 %v1507_v20  ;;  %v1522_v22 = vsel %vm1407_vm3, %v1517_v21, 0 }
 0x5bd   : > { %3767 = vmatpush3.bf16.msra.mxu1 %v1522_v22 }
 0x5be   : > { %3772 = vmatprep.subr.bf16.mxu1 %v4516_v2 }
 0x5bf   : > { %v1567_v28 = vpop.permute.xlu0 %1566 }
 0x5c0   : > { %v1572_v31 = vsel %vm1344_vm1, %v1567_v28, 0 }
 0x5c3   : > { %v1565_v33 = vpop.permute.xlu0 %1564 }
 0x5c6   : > { %v4127_v23 = vpop.eup %4126 }
 0x5c7   : > { %v1509_v24 = vsel %vm1391_vm2, %v4127_v23, 0.0 }
 0x5c8   : > { %1510 = vadd.xlane.f32.xlu1 %v1509_v24 }
 0x5d9   : > { %1626 = vrot.lane.b32.xlu1 %v5244_v62, %s4519_s11 }
 0x655   : > { %v1511_v25 = vpop.xlane.xlu1 %1510 }
 0x656   : > { %4128 = vrcp.f32 %v1511_v25 }
 0x659   : > { %v1627_v32 = vpop.permute.xlu1 %1626 }
 0x65a   : > { %v1632_v34 = vsel %vm1407_vm3, %v1627_v32, 0 }
 0x660   : > { %v4129_v26 = vpop.eup %4128 }
 0x661   : > { %v1513_v27 = vmul.f32 %v4129_v26, %v4127_v23 }
 0x663   : > { %v1514_v30 = vpack.c.bf16 %v1513_v27, %v1513_v27 }
 0x665   : > { %3769 = vmatmul.mubr.msk.bf16.vlgmr.msra.gmra.mrb[16].mxu1 %vm1391_vm2, %v1514_v30 }
 0x666   : > { %3773 = vmatpush3.bf16.xpose.msra.mxu1 %v1572_v31  ;;  %3774 = vmatprep.mubr.msk.bf16.mxu1 %vm4517_vm0, %v4516_v2 }
 0x667   : > { %3778 = vmatprep.subr.bf16.mxu1 %v4516_v2 }
 0x66d   : > { %3775 = vmatmul.mubr.msk.bf16.vlgmr.msra.gmra.mrb[20].mxu1 %vm1344_vm1, %v1565_v33 }
 0x66e   : > { %3779 = vmatpush3.bf16.msra.mxu1 %v1632_v34  ;;  %3780 = vmatprep.mubr.msk.bf16.mxu1 %vm4517_vm0, %v4516_v2 }
 0x66f   : > { %3784 = vmatprep.subr.bf16.mxu1 %v4516_v2 }
 0x738   : > { %v5282_v36 = vpop.f32.mrb[16].mxu1 }
 0x739   : > { %v3770_v37 = vpop.f32.mrb[17].mxu1 }
 0x73a   : > { %v1561_v38 = vpop.f32.mrb[18].mxu1 }
 0x73b   : > { %v3771_v39 = vpop.f32.mrb[19].mxu1 }
 0x740   : > { %v1608_v40 = vpop.f32.mrb[20].mxu1 }
 0x741   : > { %v1609_v41 = vadd.f32 %v5234_v44, %v1608_v40  ;;  %v3776_v42 = vpop.f32.mrb[21].mxu1 }
 0x742   : > { %v1611_v43 = vpop.f32.mrb[22].mxu1 }
 0x743   : > { %v3777_v45 = vpop.f32.mrb[23].mxu1  ;;  %v1614_v46 = vsel %vm1391_vm2, %v1609_v41, -inf }
 0x744   : > { %1615 = vmax.xlane.f32.xlu0 %v1614_v46 }
 0x75a   : > { %1786 = vrot.lane.b32.xlu0 %v5196_v29, %s4520_s0 }
 0x75e   : > { %2114 = vrot.lane.b32.xlu0 %v5202_v35, %s4521_s2 }
 0x7d1   : > { %v1616_v47 = vpop.xlane.xlu0 %1615 }
 0x7d2   : > { %v1617_v48 = vsub.f32 %v1609_v41, %v1616_v47 }
 0x7d4   : > { %v1618_v49 = vmul.f32 1.442695, %v1617_v48 }
 0x7d5   : > { %v1787_v50 = vpop.permute.xlu0 %1786 }
 0x7d6   : > { %4130 = vpow2.f32 %v1618_v49  ;;  %v1792_v51 = vsel %vm1344_vm1, %v1787_v50, 0 }
 0x7d7   : > { %3797 = vmatpush3.bf16.xpose.msra.mxu0 %v1792_v51 }
 0x7d8   : > { %3808 = vmatprep.subr.bf16.mxu0 %v4516_v2 }
 0x7d9   : > { %v2115_v6 = vpop.permute.xlu0 %2114 }
 0x7e0   : > { %v4131_v52 = vpop.eup %4130 }
 0x7e1   : > { %v1620_v53 = vsel %vm1391_vm2, %v4131_v52, 0.0 }
 0x7e2   : > { %1621 = vadd.xlane.f32.xlu1 %v1620_v53 }
 0x7f3   : > { %1676 = vrot.lane.b32.xlu1 %v5196_v29, %s4522_s16 }
 0x7f7   : > { %1674 = vrot.lane.b32.xlu1 %v5202_v35, %s4522_s16 }
 0x7fb   : > { %1784 = vrot.lane.b32.xlu1 %v5202_v35, %s4520_s0 }
 0x7ff   : > { %1896 = vrot.lane.b32.xlu1 %v5196_v29, %s4523_s5 }
 0x803   : > { %1894 = vrot.lane.b32.xlu1 %v5202_v35, %s4523_s5 }
 0x807   : > { %2006 = vrot.lane.b32.xlu1 %v5196_v29, %s4524_s10 }
 0x80b   : > { %2004 = vrot.lane.b32.xlu1 %v5202_v35, %s4524_s10 }
 0x80f   : > { %2116 = vrot.lane.b32.xlu1 %v5196_v29, %s4521_s2 }
 0x86f   : > { %v1622_v54 = vpop.xlane.xlu1 %1621 }
 0x870   : > { %4132 = vrcp.f32 %v1622_v54 }
 0x873   : > { %v1677_v55 = vpop.permute.xlu1 %1676 }
 0x874   : > { %v1682_v61 = vsel %vm1344_vm1, %v1677_v55, 0 }
 0x877   : > { %v1675_v56 = vpop.permute.xlu1 %1674 }
 0x87a   : > { %v4133_v57 = vpop.eup %4132 }
 0x87b   : > { %v1624_v58 = vmul.f32 %v4133_v57, %v4131_v52  ;;  %v1785_v59 = vpop.permute.xlu1 %1784 }
 0x87c   : > { %3799 = vmatmul.mubr.msk.bf16.vlgmr.msra.gmra.mrb[8].mxu0 %vm1344_vm1, %v1785_v59 }
 0x87d   : > { %v1625_v60 = vpack.c.bf16 %v1624_v58, %v1624_v58  ;;  %3810 = vmatprep.mubr.msk.bf16.mxu0 %vm4517_vm0, %v4516_v2 }
 0x87f   : > { %3781 = vmatmul.mubr.msk.bf16.vlgmr.msra.gmra.mrb[24].mxu1 %vm1391_vm2, %v1625_v60  ;;  %v1897_v35 = vpop.permute.xlu1 %1896 }
 0x880   : > { %3785 = vmatpush3.bf16.xpose.msra.mxu1 %v1682_v61  ;;  %v1902_v29 = vsel %vm1344_vm1, %v1897_v35, 0  ;;  %3786 = vmatprep.mubr.msk.bf16.mxu1 %vm4517_vm0, %v4516_v2 }
 0x881   : > { %3809 = vmatpush3.bf16.xpose.msra.mxu0 %v1902_v29  ;;  %3790 = vmatprep.subr.bf16.mxu1 %v4516_v2 }
 0x882   : > { %3820 = vmatprep.subr.bf16.mxu0 %v4516_v2 }
 0x883   : > { %v1895_v63 = vpop.permute.xlu1 %1894 }
 0x887   : > { %3787 = vmatmul.mubr.msk.bf16.vlgmr.msra.gmra.mrb[28].mxu1 %vm1344_vm1, %v1675_v56  ;;  %v2007_v0 = vpop.permute.xlu1 %2006 }
 0x888   : > { %v2012_v1 = vsel %vm1344_vm1, %v2007_v0, 0  ;;  %3811 = vmatmul.mubr.msk.bf16.vlgmr.msra.gmra.mrb[12].mxu0 %vm1344_vm1, %v1895_v63  ;;  %3792 = vmatprep.mubr.msk.bf16.mxu1 %vm4517_vm0, %v4516_v2 }
 0x889   : > { %3821 = vmatpush3.bf16.xpose.msra.mxu0 %v2012_v1  ;;  %3822 = vmatprep.mubr.msk.bf16.mxu0 %vm4517_vm0, %v4516_v2 }
 0x88a   : > { %3832 = vmatprep.subr.bf16.mxu0 %v4516_v2 }
 0x88b   : > { %v2005_v3 = vpop.permute.xlu1 %2004 }
 0x88f   : > { %v2117_v4 = vpop.permute.xlu1 %2116 }
 0x890   : > { %v2122_v5 = vsel %vm1344_vm1, %v2117_v4, 0  ;;  %3823 = vmatmul.mubr.msk.bf16.vlgmr.msra.gmra.mrb[16].mxu0 %vm1344_vm1, %v2005_v3 }
 0x891   : > { %3833 = vmatpush3.bf16.xpose.msra.mxu0 %v2122_v5  ;;  %3834 = vmatprep.mubr.msk.bf16.mxu0 %vm4517_vm0, %v4516_v2 }
 0x892   : > { %3844 = vmatprep.subr.bf16.mxu0 %v4516_v2 }
 0x898   : > { %3835 = vmatmul.mubr.msk.bf16.vlgmr.msra.gmra.mrb[20].mxu0 %vm1344_vm1, %v2115_v6 }
 0x899   : > { %3860 = vmatprep.mubr.msk.bf16.mxu0 %vm4517_vm0, %v4516_v2 }
 0x94f   : > { %v1828_v7 = vpop.f32.mrb[8].mxu0 }
 0x950   : > { %v1829_v9 = vadd.f32 %v5234_v44, %v1828_v7  ;;  %v3800_v10 = vpop.f32.mrb[9].mxu0 }
 0x951   : > { %v1831_v11 = vpop.f32.mrb[10].mxu0 }
 0x952   : > { %v5336_v12 = vpop.f32.mrb[24].mxu1  ;;  %v3801_v13 = vpop.f32.mrb[11].mxu0  ;;  %v1834_v14 = vsel %vm1391_vm2, %v1829_v9, -inf }
 0x953   : > { %v3782_v15 = vpop.f32.mrb[25].mxu1  ;;  %1835 = vmax.xlane.f32.xlu0 %v1834_v14 }
 0x954   : > { %v1671_v16 = vpop.f32.mrb[26].mxu1 }
 0x955   : > { %v3783_v17 = vpop.f32.mrb[27].mxu1 }
 0x95a   : > { %v1718_v18 = vpop.f32.mrb[28].mxu1 }
 0x95b   : > { %v1719_v19 = vadd.f32 %v5234_v44, %v1718_v18  ;;  %v3788_v20 = vpop.f32.mrb[29].mxu1  ;;  %v1938_v21 = vpop.f32.mrb[12].mxu0 }
 0x95c   : > { %v1939_v22 = vadd.f32 %v5234_v44, %v1938_v21  ;;  %v1721_v23 = vpop.f32.mrb[30].mxu1  ;;  %v3812_v24 = vpop.f32.mrb[13].mxu0 }
 0x95d   : > { %v3789_v25 = vpop.f32.mrb[31].mxu1  ;;  %v1941_v26 = vpop.f32.mrb[14].mxu0  ;;  %v1724_v27 = vsel %vm1391_vm2, %v1719_v19, -inf }
 0x95e   : > { %1725 = vmax.xlane.f32.xlu1 %v1724_v27  ;;  %v3813_v28 = vpop.f32.mrb[15].mxu0  ;;  %v1944_v30 = vsel %vm1391_vm2, %v1939_v22, -inf }
 0x95f   : > { %1945 = vmax.xlane.f32.xlu0 %v1944_v30 }
 0x963   : > { %v2048_v31 = vpop.f32.mrb[16].mxu0 }
 0x964   : > { %v2049_v32 = vadd.f32 %v5234_v44, %v2048_v31  ;;  %v3824_v33 = vpop.f32.mrb[17].mxu0 }
 0x965   : > { %v2051_v34 = vpop.f32.mrb[18].mxu0 }
 0x966   : > { %v3825_v37 = vpop.f32.mrb[19].mxu0  ;;  %v2054_v38 = vsel %vm1391_vm2, %v2049_v32, -inf }
 0x967   : > { %2055 = vmax.xlane.f32.xlu1 %v2054_v38  ;;  %v4034_v38 = vld [vmem:[%s5741_s27] sm:$0xff]  }
 0x968   : > { %3845 = vmatpush3.bf16.msra.mxu0 %v4034_v38 }
 0x969   : > { %3846 = vmatprep.subr.bf16.mxu0 %v4516_v2 }
 0x96b   : > { %v2158_v39 = vpop.f32.mrb[20].mxu0 }
 0x96c   : > { %v2159_v40 = vadd.f32 %v5234_v44, %v2158_v39  ;;  %v3836_v41 = vpop.f32.mrb[21].mxu0  ;;  %v4035_v39 = vld [vmem:[%s5741_s27 + $0x8] sm:$0xff]  }
 0x96d   : > { %v2161_v42 = vpop.f32.mrb[22].mxu0  ;;  %3847 = vmatpush3.bf16.msra.mxu0 %v4035_v39 }
 0x96e   : > { %v3837_v43 = vpop.f32.mrb[23].mxu0  ;;  %v2164_v45 = vsel %vm1391_vm2, %v2159_v40, -inf  ;;  %3848 = vmatprep.subr.bf16.mxu0 %v4516_v2 }
 0x96f   : > { %2165 = vmax.xlane.f32.xlu0 %v2164_v45 }
 0x9e0   : > { %v1836_v46 = vpop.xlane.xlu0 %1835 }
 0x9e1   : > { %v1837_v47 = vsub.f32 %v1829_v9, %v1836_v46  ;;  %v4037_v46 = vld [vmem:[%s5741_s27 + $0x18] sm:$0xff]  }
 0x9e3   : > { %v1838_v48 = vmul.f32 1.442695, %v1837_v47  ;;  %v4038_v47 = vld [vmem:[%s5741_s27 + $0x20] sm:$0xff]  }
 0x9e5   : > { %4134 = vpow2.f32 %v1838_v48 }
 0x9eb   : > { %v1726_v49 = vpop.xlane.xlu1 %1725 }
 0x9ec   : > { %v1727_v50 = vsub.f32 %v1719_v19, %v1726_v49  ;;  %v1946_v51 = vpop.xlane.xlu0 %1945 }
 0x9ed   : > { %v1947_v52 = vsub.f32 %v1939_v22, %v1946_v51 }
 0x9ee   : > { %v1728_v54 = vmul.f32 1.442695, %v1727_v50 }
 0x9ef   : > { %v4135_v53 = vpop.eup %4134  ;;  %v1948_v55 = vmul.f32 1.442695, %v1947_v52  ;;  %v4039_v52 = vld [vmem:[%s5741_s27 + $0x28] sm:$0xff]  }
 0x9f0   : > { %v1840_v56 = vsel %vm1391_vm2, %v4135_v53, 0.0 }
 0x9f1   : > { %4136 = vpow2.f32 %v1948_v55  ;;  %1841 = vadd.xlane.f32.xlu0 %v1840_v56 }
 0x9f2   : > { %4138 = vpow2.f32 %v1728_v54 }
 0x9f4   : > { %v2056_v44 = vpop.xlane.xlu1 %2055 }
 0x9f5   : > { %v2057_v57 = vsub.f32 %v2049_v32, %v2056_v44 }
 0x9f7   : > { %v2058_v58 = vmul.f32 1.442695, %v2057_v57  ;;  %v4041_v57 = vld [vmem:[%s5741_s27 + $0x38] sm:$0xff]  }
 0x9f9   : > { %4140 = vpow2.f32 %v2058_v58 }
 0x9fb   : > { %v4137_v59 = vpop.eup %4136 }
 0x9fc   : > { %v2166_v60 = vpop.xlane.xlu0 %2165  ;;  %v1950_v61 = vsel %vm1391_vm2, %v4137_v59, 0.0  ;;  %v4139_v35 = vpop.eup %4138 }
 0x9fd   : > { %v2167_v29 = vsub.f32 %v2159_v40, %v2166_v60  ;;  %1951 = vadd.xlane.f32.xlu1 %v1950_v61  ;;  %v1730_v0 = vsel %vm1391_vm2, %v4139_v35, 0.0  ;;  %v4036_v40 = vld [vmem:[%s5741_s27 + $0x10] sm:$0xff]  }
 0x9fe   : > { %3849 = vmatpush3.bf16.msra.mxu0 %v4036_v40 }
 0x9ff   : > { %v2168_v63 = vmul.f32 1.442695, %v2167_v29  ;;  %3850 = vmatprep.subr.bf16.mxu0 %v4516_v2 }
 0xa01   : > { %4142 = vpow2.f32 %v2168_v63  ;;  %1731 = vadd.xlane.f32.xlu1 %v1730_v0 }
 0xa02   : > { %3851 = vmatpush3.bf16.msra.mxu0 %v4037_v46  ;;  %v4068_v46 = vld [vmem:[%s5742_s15 + $0x84] ss:$16 sps:$4 sm:$0xff]  }
 0xa03   : > { %v4141_v1 = vpop.eup %4140  ;;  %3852 = vmatprep.subr.bf16.mxu0 %v4516_v2 }
 0xa04   : > { %v2060_v3 = vsel %vm1391_vm2, %v4141_v1, 0.0 }
 0xa05   : > { %2061 = vadd.xlane.f32.xlu0 %v2060_v3 }
 0xa06   : > { %3853 = vmatpush3.bf16.msra.mxu0 %v4038_v47  ;;  %v4071_v47 = vld [vmem:[%s5742_s15 + $0x8c] ss:$16 sps:$4 sm:$0xff]  }
 0xa07   : > { %3854 = vmatprep.subr.bf16.mxu0 %v4516_v2 }
 0xa0a   : > { %3855 = vmatpush3.bf16.msra.mxu0 %v4039_v52  ;;  %v4072_v52 = vld [vmem:[%s5742_s15 + $0xa0] ss:$16 sps:$4 sm:$0xff]  }
 0xa0b   : > { %v4143_v4 = vpop.eup %4142  ;;  %3856 = vmatprep.subr.bf16.mxu0 %v4516_v2 }
 0xa0c   : > { %v2170_v5 = vsel %vm1391_vm2, %v4143_v4, 0.0 }
 0xa0d   : > { %2171 = vadd.xlane.f32.xlu0 %v2170_v5 }
 0xa12   : > { %1736 = vrot.lane.b32.xlu1 %v5244_v62, %s4522_s16 }
 0xa16   : > { %1956 = vrot.lane.b32.xlu1 %v5244_v62, %s4523_s5 }
 0xa1a   : > { %2066 = vrot.lane.b32.xlu1 %v5244_v62, %s4524_s10 }
 0xa1e   : > { %2176 = vrot.lane.b32.xlu1 %v5244_v62, %s4521_s2 }
 0xa22   : > { %2229 = vrot.lane.b32.xlu1 %v5336_v12, %s4524_s10  ;;  %s3097_s10 = sshll.u32 %s5138_s1, 4  ;;  %s5518_s10 = int_to_ptr.vmem [resolvable:$true] %s3097_s10 }
 0xa23   : > { %1846 = vrot.lane.b32.xlu0 %v5244_v62, %s4520_s0 }
 0xa27   : > { %2225 = vrot.lane.b32.xlu0 %v5282_v36, %s4521_s2 }
 0xa7e   : > { %v1842_v9 = vpop.xlane.xlu0 %1841 }
 0xa8a   : > { %v1952_v6 = vpop.xlane.xlu1 %1951 }
 0xa8e   : > { %v1732_v7 = vpop.xlane.xlu1 %1731 }
 0xa8f   : > { %4144 = vrcp.f32 %v1732_v7 }
 0xa90   : > { %4146 = vrcp.f32 %v1842_v9 }
 0xa91   : > { %4148 = vrcp.f32 %v1952_v6 }
 0xa92   : > { %v1737_v10 = vpop.permute.xlu1 %1736  ;;  %v2062_v13 = vpop.xlane.xlu0 %2061 }
 0xa93   : > { %v1742_v11 = vsel %vm1407_vm3, %v1737_v10, 0  ;;  %4150 = vrcp.f32 %v2062_v13 }
 0xa94   : > { %3791 = vmatpush3.bf16.msra.mxu1 %v1742_v11 }
 0xa95   : > { %3802 = vmatprep.subr.bf16.mxu1 %v4516_v2 }
 0xa96   : > { %v1957_v19 = vpop.permute.xlu1 %1956 }
 0xa97   : > { %v1962_v22 = vsel %vm1407_vm3, %v1957_v19, 0 }
 0xa99   : > { %v4145_v14 = vpop.eup %4144 }
 0xa9a   : > { %v1734_v12 = vmul.f32 %v4145_v14, %v4139_v35  ;;  %v2172_v15 = vpop.xlane.xlu0 %2171  ;;  %v4147_v16 = vpop.eup %4146 }
 0xa9b   : > { %v1844_v18 = vmul.f32 %v4147_v16, %v4135_v53  ;;  %v4149_v21 = vpop.eup %4148  ;;  %v2067_v24 = vpop.permute.xlu1 %2066  ;;  %4152 = vrcp.f32 %v2172_v15  ;;  %v4040_v53 = vld [vmem:[%s5741_s27 + $0x30] sm:$0xff]  }
 0xa9c   : > { %v1735_v62 = vpack.c.bf16 %v1734_v12, %v1734_v12  ;;  %v1954_v23 = vmul.f32 %v4149_v21, %v4137_v59  ;;  %v2072_v27 = vsel %vm1407_vm3, %v2067_v24, 0  ;;  %3857 = vmatpush3.bf16.msra.mxu0 %v4040_v53  ;;  %v4045_v24 = vld [vmem:[%s5742_s15 + $0x8] ss:$16 sps:$4 sm:$0xff]  }
 0xa9d   : > { %v1845_v20 = vpack.c.bf16 %v1844_v18, %v1844_v18  ;;  %v4151_v26 = vpop.eup %4150  ;;  %3858 = vmatprep.subr.bf16.mxu0 %v4516_v2  ;;  %v4075_v53 = vld [vmem:[%s5742_s15 + $0xa8] ss:$16 sps:$4 sm:$0xff]  }
 0xa9e   : > { %3793 = vmatmul.mubr.msk.bf16.vlgmr.msra.gmra.mrb[32].mxu1 %vm1391_vm2, %v1735_v62  ;;  %v1847_v36 = vpop.permute.xlu0 %1846  ;;  %v1955_v25 = vpack.c.bf16 %v1954_v23, %v1954_v23  ;;  %v2064_v28 = vmul.f32 %v4151_v26, %v4141_v1  ;;  %v3488_v62 = vld [vmem:[%s5744_s19] ss:$0 sm:$0xff]  ;;  %v4044_v23 = vld [vmem:[%s5742_s15 + $0x4] ss:$16 sps:$4 sm:$0xff]   ;;  %s4369_s19 = scalar_lea.vmem %s5518_s10, 128 }
 0xa9f   : > { %v1852_v17 = vsel %vm1407_vm3, %v1847_v36, 0  ;;  %3804 = vmatprep.mubr.msk.bf16.mxu1 %vm4517_vm0, %v4516_v2  ;;  %v2177_v30 = vpop.permute.xlu1 %2176  ;;  %v4050_v26 = vld [vmem:[%s5742_s15 + $0x24] ss:$16 sps:$4 sm:$0xff]   ;;  %p4370_p0 = scmp.ne.s32.totalorder %s5518_s10, %s4369_s19 }
 0xaa0   : > { %3803 = vmatpush3.bf16.msra.mxu1 %v1852_v17  ;;  %v2065_v31 = vpack.c.bf16 %v2064_v28, %v2064_v28  ;;  %v2182_v33 = vsel %vm1407_vm3, %v2177_v30, 0  ;;  %3859 = vmatpush3.bf16.msra.mxu0 %v4041_v57  ;;  %v4048_v28 = vld [vmem:[%s5742_s15 + $0x20] ss:$16 sps:$4 sm:$0xff]   ;;  %v4051_v30 = vld [vmem:[%s5742_s15 + $0x28] ss:$16 sps:$4 sm:$0xff]  }
 0xaa1   : > { %3814 = vmatprep.subr.bf16.mxu1 %v4516_v2  ;;  %v4086_v57 = vld [vmem:[%s5742_s15 + $0xe4] ss:$16 sps:$4 sm:$0xff]  }
 0xaa2   : > { %v2226_v1 = vpop.permute.xlu0 %2225 }
 0xaa3   : > { %v2230_v3 = vpop.permute.xlu1 %2229 }
 0xaa5   : > { %v4153_v32 = vpop.eup %4152 }
 0xaa6   : > { %3805 = vmatmul.mubr.msk.bf16.vlgmr.msra.gmra.mrb[36].mxu1 %vm1391_vm2, %v1845_v20  ;;  %v2174_v34 = vmul.f32 %v4153_v32, %v4143_v4  ;;  %v4158_v20 = vld [vmem:[%s5138_s1] sm:$0xff] }
 0xaa7   : > { %3815 = vmatpush3.bf16.msra.mxu1 %v1962_v22  ;;  %3816 = vmatprep.mubr.msk.bf16.mxu1 %vm4517_vm0, %v4516_v2  ;;  %v4042_v22 = vld [vmem:[%s5742_s15] ss:$16 sps:$4 sm:$0xff]   ;;  %v4059_v32 = vld [vmem:[%s5742_s15 + $0x4c] ss:$16 sps:$4 sm:$0xff]  }
 0xaa8   : > { %3826 = vmatprep.subr.bf16.mxu1 %v4516_v2  ;;  %v2175_v37 = vpack.c.bf16 %v2174_v34, %v2174_v34  ;;  %v4057_v34 = vld [vmem:[%s5742_s15 + $0x48] ss:$16 sps:$4 sm:$0xff]  }
 0xaae   : > { %3817 = vmatmul.mubr.msk.bf16.vlgmr.msra.gmra.mrb[40].mxu1 %vm1391_vm2, %v1955_v25  ;;  %v4047_v25 = vld [vmem:[%s5742_s15 + $0xc] ss:$16 sps:$4 sm:$0xff]  }
 0xaaf   : > { %3827 = vmatpush3.bf16.msra.mxu1 %v2072_v27  ;;  %3828 = vmatprep.mubr.msk.bf16.mxu1 %vm4517_vm0, %v4516_v2  ;;  %v4053_v27 = vld [vmem:[%s5742_s15 + $0x2c] ss:$16 sps:$4 sm:$0xff]  }
 0xab0   : > { %3838 = vmatprep.subr.bf16.mxu1 %v4516_v2  ;;  %2662 = vmatprep.subr.bf16.mxu0 %v4047_v25  ;;  %v4110_v25 = vld [vmem:[%s5134_s3 + $0x68] sm:$0xff]  }
 0xab6   : > { %3829 = vmatmul.mubr.msk.bf16.vlgmr.msra.gmra.mrb[44].mxu1 %vm1391_vm2, %v2065_v31  ;;  %v4056_v31 = vld [vmem:[%s5742_s15 + $0x44] ss:$16 sps:$4 sm:$0xff]  }
 0xab7   : > { %3839 = vmatpush3.bf16.msra.mxu1 %v2182_v33  ;;  %3840 = vmatprep.mubr.msk.bf16.mxu1 %vm4517_vm0, %v4516_v2  ;;  %v2252_v2 = vsel %vm1344_vm1, %v5257_v8, %v2226_v1  ;;  %v4054_v33 = vld [vmem:[%s5742_s15 + $0x40] ss:$16 sps:$4 sm:$0xff]  }
 0xab8   : > { %v2254_v6 = vsel %vm2253_vm4, %v2252_v2, %v2230_v3  ;;  %2621 = vmatprep.subr.bf16.mxu1 %v4044_v23  ;;  %v4108_v23 = vld [vmem:[%s5134_s3 + $0x20] sm:$0xff]  }
 0xabe   : > { %3841 = vmatmul.mubr.msk.bf16.vlgmr.msra.gmra.mrb[48].mxu1 %vm1391_vm2, %v2175_v37 }
 0xabf   : > { %2622 = vmatpush1.bf16.msra.mxu1 %v4042_v22  ;;  %v4107_v22 = vld [vmem:[%s5134_s3 + $0xe0] sm:$0xff]  }
 0xac0   : > { %2623 = vmatprep.subr.bf16.mxu1 %v4050_v26  ;;  %v4111_v26 = vld [vmem:[%s5134_s3 + $0xe8] sm:$0xff]  }
 0xac3   : > { %2624 = vmatpush1.bf16.msra.mxu1 %v4048_v28  ;;  %v4113_v28 = vld [vmem:[%s5134_s3 + $0xa8] sm:$0xff]  }
 0xac4   : > { %2625 = vmatprep.subr.bf16.mxu1 %v4056_v31  ;;  %v4115_v31 = vld [vmem:[%s5134_s3 + $0xf0] sm:$0xff]  }
 0xac7   : > { %2626 = vmatpush1.bf16.msra.mxu1 %v4054_v33  ;;  %v4117_v33 = vld [vmem:[%s5134_s3 + $0xb0] sm:$0xff]  }
 0xb71   : > { %v1778_v41 = vpop.f32.mrb[32].mxu1 }
 0xb72   : > { %v3794_v42 = vpop.f32.mrb[33].mxu1  ;;  %2233 = vrot.lane.b32.xlu0 %v1778_v41, %s4523_s5  ;;  %v4062_v41 = vld [vmem:[%s5742_s15 + $0x64] ss:$16 sps:$4 sm:$0xff]   ;;  %s3567_s5 = sshll.u32 %s5749_s9, 7 }
 0xb73   : > { %v1781_v43 = vpop.f32.mrb[34].mxu1  ;;  %v4065_v42 = vld [vmem:[%s5742_s15 + $0x6c] ss:$16 sps:$4 sm:$0xff]   ;;  %2627 = vmatprep.subr.bf16.mxu1 %v4062_v41  ;;  %s5516_s29 = scalar_lea.hbm %s5753_s22, %s3567_s5 }
 0xb74   : > { %v3795_v45 = vpop.f32.mrb[35].mxu1  ;;  %v4060_v43 = vld [vmem:[%s5742_s15 + $0x60] ss:$16 sps:$4 sm:$0xff]  }
 0xb75   : > { %v4063_v45 = vld [vmem:[%s5742_s15 + $0x68] ss:$16 sps:$4 sm:$0xff]   ;;  %2628 = vmatpush1.bf16.msra.mxu1 %v4060_v43 }
 0xb76   : > { %2629 = vmatprep.subr.bf16.mxu1 %v4068_v46 }
 0xb79   : > { %v1888_v48 = vpop.f32.mrb[36].mxu1 }
 0xb7a   : > { %2237 = vrot.lane.b32.xlu1 %v1888_v48, %s4520_s0  ;;  %v3806_v49 = vpop.f32.mrb[37].mxu1  ;;  %v4066_v48 = vld [vmem:[%s5742_s15 + $0x80] ss:$16 sps:$4 sm:$0xff]  }
 0xb7b   : > { %v1891_v50 = vpop.f32.mrb[38].mxu1  ;;  %v4069_v49 = vld [vmem:[%s5742_s15 + $0x88] ss:$16 sps:$4 sm:$0xff]   ;;  %2630 = vmatpush1.bf16.msra.mxu1 %v4066_v48 }
 0xb7c   : > { %v3807_v51 = vpop.f32.mrb[39].mxu1  ;;  %v4074_v50 = vld [vmem:[%s5742_s15 + $0xa4] ss:$16 sps:$4 sm:$0xff]  }
 0xb7d   : > { %v4077_v51 = vld [vmem:[%s5742_s15 + $0xac] ss:$16 sps:$4 sm:$0xff]   ;;  %2631 = vmatprep.subr.bf16.mxu1 %v4074_v50 }
 0xb7f   : > { %2632 = vmatpush1.bf16.msra.mxu1 %v4072_v52 }
 0xb81   : > { %v1998_v54 = vpop.f32.mrb[40].mxu1 }
 0xb82   : > { %2241 = vrot.lane.b32.xlu0 %v1998_v54, %s4522_s16  ;;  %v3818_v55 = vpop.f32.mrb[41].mxu1  ;;  %v4080_v54 = vld [vmem:[%s5742_s15 + $0xc4] ss:$16 sps:$4 sm:$0xff]  }
 0xb83   : > { %v2001_v56 = vpop.f32.mrb[42].mxu1  ;;  %v4083_v55 = vld [vmem:[%s5742_s15 + $0xcc] ss:$16 sps:$4 sm:$0xff]   ;;  %2633 = vmatprep.subr.bf16.mxu1 %v4080_v54 }
 0xb84   : > { %v3819_v44 = vpop.f32.mrb[43].mxu1  ;;  %v4078_v56 = vld [vmem:[%s5742_s15 + $0xc0] ss:$16 sps:$4 sm:$0xff]  }
 0xb85   : > { %v4081_v44 = vld [vmem:[%s5742_s15 + $0xc8] ss:$16 sps:$4 sm:$0xff]   ;;  %2634 = vmatpush1.bf16.msra.mxu1 %v4078_v56 }
 0xb86   : > { %2635 = vmatprep.subr.bf16.mxu1 %v4086_v57 }
 0xb89   : > { %v2108_v58 = vpop.f32.mrb[44].mxu1 }
 0xb8a   : > { %2245 = vrot.lane.b32.xlu1 %v2108_v58, %s4519_s11  ;;  %v3830_v59 = vpop.f32.mrb[45].mxu1  ;;  %v4089_v58 = vld [vmem:[%s5742_s15 + $0xec] ss:$16 sps:$4 sm:$0xff]  }
 0xb8b   : > { %v2111_v60 = vpop.f32.mrb[46].mxu1  ;;  %v4084_v59 = vld [vmem:[%s5742_s15 + $0xe0] ss:$16 sps:$4 sm:$0xff]  }
 0xb8c   : > { %v3831_v61 = vpop.f32.mrb[47].mxu1  ;;  %v4087_v60 = vld [vmem:[%s5742_s15 + $0xe8] ss:$16 sps:$4 sm:$0xff]   ;;  %2636 = vmatpush1.bf16.msra.mxu1 %v4084_v59 }
 0xb8d   : > { %v4525_v61 = vmov 0  }
 0xb8e   : > { %2653 = vmatprep.mubr.bf16.mxu1 %v4525_v61 }
 0xb91   : > { %v2218_v35 = vpop.f32.mrb[48].mxu1 }
 0xb92   : > { %2249 = vrot.lane.b32.xlu0 %v2218_v35, %s4518_s7  ;;  %v3842_v29 = vpop.f32.mrb[49].mxu1  ;;  %v4090_v35 = vld [vmem:[%s5134_s3 + $0x40] sm:$0xff]   ;;  %s5745_s7 = sld [smem:[#allocation51_spill]] }
 0xb93   : > { %v2221_v63 = vpop.f32.mrb[50].mxu1  ;;  %v4091_v29 = vld [vmem:[%s5134_s3 + $0xc0] sm:$0xff]   ;;  %3644 = vmatprep.subr.bf16.mxu1 %v4090_v35 }
 0xb94   : > { %v3843_v0 = vpop.f32.mrb[51].mxu1 }
 0xb98   : > { %s5746_s25 = scalar_lea.vmem %s5745_s7, %s5086_s26  ;;  %s4526_s26 = smov [#allocation14]  }
 0xbe4   : > { %v2234_v4 = vpop.permute.xlu0 %2233 }
 0xbe5   : > { %v2256_v9 = vsel %vm2255_vm5, %v2254_v6, %v2234_v4  ;;  %v3497_v4 = vld [vmem:[%s5746_s25] ss:$0 sm:$0xff] }
 0xbec   : > { %v2238_v5 = vpop.permute.xlu1 %2237 }
 0xbed   : > { %v2258_v11 = vsel %vm2257_vm6, %v2256_v9, %v2238_v5  ;;  %v3498_v5 = vld [vmem:[%s977_s13] ss:$0 sm:$0xff]  ;;  %v4092_v9 = vld [vmem:[%s5134_s3] sm:$0xff]  }
 0xbf4   : > { %v2242_v7 = vpop.permute.xlu0 %2241 }
 0xbf5   : > { %v2260_v13 = vsel %vm2259_vm7, %v2258_v11, %v2242_v7 }
 0xbfc   : > { %v2246_v10 = vpop.permute.xlu1 %2245 }
 0xbfd   : > { %v2262_v14 = vsel %vm2261_vm8, %v2260_v13, %v2246_v10  ;;  %v4093_v10 = vld [vmem:[%s5134_s3 + $0x80] sm:$0xff]   ;;  %v4094_v13 = vld [vmem:[%s5134_s3 + $0x48] sm:$0xff]  }
 0xc04   : > { %v2250_v8 = vpop.permute.xlu0 %2249 }
 0xc05   : > { %v2264_v12 = vsel %vm2263_vm9, %v2262_v14, %v2250_v8  ;;  %v4095_v14 = vld [vmem:[%s5134_s3 + $0xc8] sm:$0xff]  }
 0xc06   : > { %v2265_v15 = vpack.c.bf16 %v2264_v12, %v2264_v12  ;;  %v4096_v8 = vld [vmem:[%s5134_s3 + $0x8] sm:$0xff]  }
 0xc07   : > { %v4097_v12 = vld [vmem:[%s5134_s3 + $0x88] sm:$0xff]  }
 0xc08   : > { %3861 = vmatmul.mubr.bf16.vlgmr.msra.gmra.mrb[24].mxu0 %v2265_v15  ;;  %v4098_v15 = vld [vmem:[%s5134_s3 + $0x50] sm:$0xff]  }
 0xc09   : > { %2663 = vmatpush1.bf16.msra.mxu0 %v4045_v24  ;;  %2694 = vmatprep.mubr.bf16.mxu0 %v4525_v61  ;;  %v4109_v24 = vld [vmem:[%s5134_s3 + $0xa0] sm:$0xff]  }
 0xc0a   : > { %2664 = vmatprep.subr.bf16.mxu0 %v4053_v27  ;;  %v4112_v27 = vld [vmem:[%s5134_s3 + $0x28] sm:$0xff]  }
 0xc0d   : > { %2665 = vmatpush1.bf16.msra.mxu0 %v4051_v30  ;;  %v4114_v30 = vld [vmem:[%s5134_s3 + $0x70] sm:$0xff]  }
 0xc0e   : > { %2666 = vmatprep.subr.bf16.mxu0 %v4059_v32  ;;  %v4116_v32 = vld [vmem:[%s5134_s3 + $0x30] sm:$0xff]  }
 0xc11   : > { %2667 = vmatpush1.bf16.msra.mxu0 %v4057_v34  ;;  %v4118_v34 = vld [vmem:[%s5134_s3 + $0x78] sm:$0xff]  }
 0xc12   : > { %2668 = vmatprep.subr.bf16.mxu0 %v4065_v42 }
 0xc15   : > { %2669 = vmatpush1.bf16.msra.mxu0 %v4063_v45  ;;  %v2439_v45 = vld [vmem:[%s5124_s20] sm:$0xf] }
 0xc16   : > { %2670 = vmatprep.subr.bf16.mxu0 %v4071_v47 }
 0xc19   : > { %2671 = vmatpush1.bf16.msra.mxu0 %v4069_v49 }
 0xc1a   : > { %2672 = vmatprep.subr.bf16.mxu0 %v4077_v51 }
 0xc1d   : > { %2673 = vmatpush1.bf16.msra.mxu0 %v4075_v53 }
 0xc1e   : > { %2674 = vmatprep.subr.bf16.mxu0 %v4083_v55 }
 0xc21   : > { %2675 = vmatpush1.bf16.msra.mxu0 %v4081_v44 }
 0xc22   : > { %2676 = vmatprep.subr.bf16.mxu0 %v4089_v58 }
 0xc25   : > { %2677 = vmatpush1.bf16.msra.mxu0 %v4087_v60 }
 0xc26   : > { %3666 = vmatprep.subr.bf16.mxu0 %v4091_v29 }
 0xcdb   : > { %v2371_v16 = vpop.f32.mrb[24].mxu0 }
 0xcdc   : > { %v2372_v36 = vadd.f32 %v3488_v62, %v2371_v16  ;;  %v3862_v17 = vpop.f32.mrb[25].mxu0  ;;  %v4099_v62 = vld [vmem:[%s5134_s3 + $0xd0] sm:$0xff]  }
 0xcdd   : > { %v2374_v18 = vpop.f32.mrb[26].mxu0  ;;  %v4100_v16 = vld [vmem:[%s5134_s3 + $0x10] sm:$0xff]   ;;  %v4102_v17 = vld [vmem:[%s5134_s3 + $0x58] sm:$0xff]  }
 0xcde   : > { %v3863_v19 = vpop.f32.mrb[27].mxu0  ;;  %v2377_v21 = vadd.f32 %v4158_v20, %v2372_v36  ;;  %v4101_v36 = vld [vmem:[%s5134_s3 + $0x90] sm:$0xff]   ;;  %v4103_v18 = vld [vmem:[%s5134_s3 + $0xd8] sm:$0xff]  }
 0xcdf   : > { %v4104_v19 = vld [vmem:[%s5134_s3 + $0x18] sm:$0xff]  }
 0xce0   : > { %2380 = vadd.xlane.f32.xlu1 %v2377_v21  ;;  %v4105_v20 = vld [vmem:[%s5134_s3 + $0x98] sm:$0xff]  }
 0xd6d   : > { %v2381_v37 = vpop.xlane.xlu1 %2380 }
 0xd6e   : > { %v2383_v38 = vmul.f32 0.0078125, %v2381_v37  ;;  %v4119_v37 = vld [vmem:[%s5134_s3 + $0xf8] sm:$0xff]  }
 0xd70   : > { %v2384_v39 = vsub.f32 %v2377_v21, %v2383_v38  ;;  %v4106_v21 = vld [vmem:[%s5134_s3 + $0x60] sm:$0xff]   ;;  %v4120_v38 = vld [vmem:[%s5134_s3 + $0x38] sm:$0xff]  }
 0xd72   : > { %v2385_v40 = vmul.f32 %v2384_v39, %v2384_v39 }
 0xd74   : > { %2386 = vadd.xlane.f32.xlu0 %v2385_v40  ;;  %v2441_v40 = vlaneseq }
 0xd76   : > { %v2442_v41 = vshrl.u32 %v2441_v40, 7 }
 0xd78   : > { %v2443_v42 = vsub.s32 0, %v2442_v41  ;;  %v2451_v43 = vsub.s32 2, %v2442_v41  ;;  %v2447_v46 = vsub.s32 1, %v2442_v41  ;;  %v2455_v47 = vsub.s32 3, %v2442_v41 }
 0xd7a   : > { %v2444_v48 = vrot.slane %v2439_v45, %v2443_v42  ;;  %v2452_v49 = vrot.slane %v2439_v45, %v2451_v43  ;;  %v2448_v50 = vrot.slane %v2439_v45, %v2447_v46  ;;  %v2456_v51 = vrot.slane %v2439_v45, %v2455_v47 }
 0xe01   : > { %v2387_v63 = vpop.xlane.xlu0 %2386 }
 0xe02   : > { %v2388_v0 = vmul.f32 0.0078125, %v2387_v63 }
 0xe04   : > { %v2389_v1 = vadd.f32 1e-05, %v2388_v0 }
 0xe06   : > { %4154 = vrsqrt.f32 %v2389_v1 }
 0xe10   : > { %v4155_v3 = vpop.eup %4154 }
 0xe11   : > { %v2391_v2 = vmul.f32 %v4155_v3, %v2384_v39  ;;  %v4121_v39 = vld [vmem:[%s5134_s3 + $0xb8] sm:$0xff]  }
 0xe13   : > { %v2398_v6 = vmul.f32 %v3497_v4, %v2391_v2 }
 0xe15   : > { %v5460_v7 = vadd.f32 %v3498_v5, %v2398_v6 }
 0xe17   : > { %v2406_v11 = vpack.c.bf16 %v5460_v7, %v5460_v7 }
 0xe19   : > { %2654 = vmatmul.mubr.bf16.vlgmr.msra.gmra.mrb[52].mxu1 %v2406_v11  ;;  %2695 = vmatmul.mubr.bf16.vlgmr.msra.gmra.mrb[28].mxu0 %v2406_v11 }
 0xe1a   : > { %3645 = vmatpush3.bf16.msra.mxu1 %v4092_v9  ;;  %3667 = vmatpush3.bf16.msra.mxu0 %v4093_v10  ;;  %v3531_v10 = vld [vmem:[%s984_s6] ss:$0 sm:$0xff]  ;;  %s5750_s6 = sld [smem:[#allocation37_spill]] }
 0xe1b   : > { %3646 = vmatprep.subr.bf16.mxu1 %v4094_v13  ;;  %3668 = vmatprep.subr.bf16.mxu0 %v4095_v14 }
 0xe1e   : > { %3647 = vmatpush3.bf16.msra.mxu1 %v4096_v8  ;;  %3669 = vmatpush3.bf16.msra.mxu0 %v4097_v12 }
 0xe1f   : > { %3648 = vmatprep.subr.bf16.mxu1 %v4098_v15  ;;  %3670 = vmatprep.subr.bf16.mxu0 %v4099_v62 }
 0xe20   : > { %p5755_p13 = scmp.ne.s32.totalorder %s5750_s6, 0 }
 0xe22   : > { %3649 = vmatpush3.bf16.msra.mxu1 %v4100_v16  ;;  %3671 = vmatpush3.bf16.msra.mxu0 %v4101_v36  ;;  %p4371_p11 = pnand %p4370_p0, %p5755_p13 }
 0xe23   : > { %3650 = vmatprep.subr.bf16.mxu1 %v4102_v17  ;;  %3672 = vmatprep.subr.bf16.mxu0 %v4103_v18 }
 0xe24   : > { %p4372_p12 = pneg %p4371_p11 }
 0xe26   : > { %3651 = vmatpush3.bf16.msra.mxu1 %v4104_v19  ;;  %3673 = vmatpush3.bf16.msra.mxu0 %v4105_v20 }
 0xe27   : > { %3652 = vmatprep.subr.bf16.mxu1 %v4106_v21  ;;  %3674 = vmatprep.subr.bf16.mxu0 %v4107_v22 }
 0xe2a   : > { %3653 = vmatpush3.bf16.msra.mxu1 %v4108_v23  ;;  %3675 = vmatpush3.bf16.msra.mxu0 %v4109_v24 }
 0xe2b   : > { %3654 = vmatprep.subr.bf16.mxu1 %v4110_v25  ;;  %3676 = vmatprep.subr.bf16.mxu0 %v4111_v26 }
 0xe2e   : > { %3655 = vmatpush3.bf16.msra.mxu1 %v4112_v27  ;;  %3677 = vmatpush3.bf16.msra.mxu0 %v4113_v28  ;;  %v3565_v28 = vld [vmem:[%s990_s18] ss:$0 sm:$0xff]  ;;  %s4373_s18 = sshll.u32 %s4526_s26, 4  ;;  %s4374_s18 = int_to_ptr.vmem [resolvable:$false] %s4373_s18 }
 0xe2f   : > { %3656 = vmatprep.subr.bf16.mxu1 %v4114_v30  ;;  %3678 = vmatprep.subr.bf16.mxu0 %v4115_v31  ;;  %s4375_s12 = scalar_lea.vmem %s4374_s18, 256  ;;  %p4376_p8 = scmp.lt.s32.totalorder %s5518_s10, %s4374_s18 }
 0xe30   : > { %p4377_p9 = scmp.lt.s32.totalorder %s4375_s12, %s4369_s19 }
 0xe32   : > { %3657 = vmatpush3.bf16.msra.mxu1 %v4116_v32  ;;  %3679 = vmatpush3.bf16.msra.mxu0 %v4117_v33  ;;  %p4378_p2 = por %p4377_p9, %p4376_p8 }
 0xe33   : > { %3658 = vmatprep.subr.bf16.mxu1 %v4118_v34  ;;  %3680 = vmatprep.subr.bf16.mxu0 %v4119_v37 }
 0xe34   : > { %p4379_p5 = pnand %p4378_p2, %p4372_p12 }
 0xe36   : > { %3659 = vmatpush3.bf16.msra.mxu1 %v4120_v38  ;;  %3681 = vmatpush3.bf16.msra.mxu0 %v4121_v39 }
 0xeec   : > { %v2655_v52 = vpop.f32.mrb[52].mxu1  ;;  %v2696_v53 = vpop.f32.mrb[28].mxu0 }
 0xeed   : > { %v2656_v54 = vadd.f32 %v2655_v52, %v2444_v48  ;;  %v2697_v55 = vadd.f32 %v2696_v53, %v2452_v49  ;;  %v2657_v56 = vpop.f32.mrb[53].mxu1  ;;  %v2698_v44 = vpop.f32.mrb[29].mxu0 }
 0xeee   : > { %v2658_v57 = vadd.f32 %v2657_v56, %v2448_v50  ;;  %v2699_v58 = vadd.f32 %v2698_v44, %v2456_v51  ;;  %v2659_v59 = vpop.f32.mrb[54].mxu1  ;;  %v2700_v60 = vpop.f32.mrb[30].mxu0 }
 0xeef   : > { %v2703_v61 = vmax.f32 %v2656_v54, 0.0  ;;  %v2705_v35 = vmax.f32 %v2697_v55, 0.0  ;;  %v2660_v29 = vpop.f32.mrb[55].mxu1  ;;  %v2701_v63 = vpop.f32.mrb[31].mxu0 }
 0xef0   : > { %v2704_v0 = vmax.f32 %v2658_v57, 0.0  ;;  %v2706_v1 = vmax.f32 %v2699_v58, 0.0 }
 0xef1   : > { %v2707_v2 = vpack.c.bf16 %v2703_v61, %v2703_v61  ;;  %v2709_v5 = vpack.c.bf16 %v2705_v35, %v2705_v35 }
 0xef2   : > { %v2708_v3 = vpack.c.bf16 %v2704_v0, %v2704_v0  ;;  %v2710_v4 = vpack.c.bf16 %v2706_v1, %v2706_v1 }
 0xef4   : > { %3006 = vmatprep.mubr.bf16.mxu1 %v2708_v3  ;;  %3046 = vmatprep.mubr.bf16.mxu0 %v2710_v4 }
 0xef5   : > { %3007 = vmatmul.mubr.bf16.vlgmr.msra.gmra.mrb[56].mxu1 %v2707_v2  ;;  %3047 = vmatmul.mubr.bf16.vlgmr.msra.gmra.mrb[32].mxu0 %v2709_v5 }
 0xfc8   : > { %v3660_v6 = vpop.f32.mrb[56].mxu1  ;;  %v3682_v9 = vpop.f32.mrb[32].mxu0 }
 0xfc9   : > { %v3661_v11 = vpop.f32.mrb[57].mxu1  ;;  %v3683_v13 = vpop.f32.mrb[33].mxu0 }
 0xfca   : > { %v3662_v14 = vadd.f32 %v3661_v11, %v3660_v6  ;;  %v3684_v8 = vadd.f32 %v3683_v13, %v3682_v9  ;;  %v3663_v12 = vpop.f32.mrb[58].mxu1  ;;  %v3685_v15 = vpop.f32.mrb[34].mxu0 }
 0xfcb   : > { %v3664_v62 = vpop.f32.mrb[59].mxu1  ;;  %v3686_v16 = vpop.f32.mrb[35].mxu0 }
 0xfcc   : > { %v3009_v36 = vadd.f32 %v3662_v14, %v3531_v10 }
 0xfce   : > { %v3049_v17 = vadd.f32 %v3684_v8, %v3009_v36 }
 0xfd0   : > { %v3054_v18 = vadd.f32 %v3049_v17, %v5460_v7  ;;  %v3564_v7 = vld [vmem:[%s987_s30] ss:$0 sm:$0xff]  ;;  %s3084_s30 = scalar_lea.sflag [#allocation4], %s5044_s4 }
 0xfd2   : > { %3057 = vadd.xlane.f32.xlu0 %v3054_v18 }
0x105f   : > { %v3058_v19 = vpop.xlane.xlu0 %3057 }
0x1060   : > { %v3059_v20 = vmul.f32 0.0078125, %v3058_v19 }
0x1062   : > { %v3060_v21 = vsub.f32 %v3054_v18, %v3059_v20 }
0x1064   : > { %v3061_v22 = vmul.f32 %v3060_v21, %v3060_v21 }
0x1066   : > { %3062 = vadd.xlane.f32.xlu1 %v3061_v22 }
0x10f3   : > { %v3063_v23 = vpop.xlane.xlu1 %3062 }
0x10f4   : > { %v3064_v24 = vmul.f32 0.0078125, %v3063_v23 }
0x10f6   : > { %v3065_v25 = vadd.f32 1e-05, %v3064_v24 }
0x10f8   : > { %4156 = vrsqrt.f32 %v3065_v25 }
0x1102   : > { %v4157_v26 = vpop.eup %4156 }
0x1103   : > { %v3067_v27 = vmul.f32 %v4157_v26, %v3060_v21 }
0x1105   : > { %v3074_v30 = vmul.f32 %v3564_v7, %v3067_v27 }
0x1107   : > { %v3081_v31 = vadd.f32 %v3565_v28, %v3074_v30 }
0x1109   : > { %3082 = vst [vmem:[%s5138_s1] sm:$0xff] %v3081_v31 }
0x110a   : > { %4382 = shalt.err (!%p4379_p5)
}
0x110b   : > { %s4383_s4 = scalar_lea.hbm %s5516_s29, 128  ;;  %s4387_s7 = scalar_lea.hbm %s5754_s17, 256 }
0x110c   : > { %p4384_p7 = scmp.ne.s32.totalorder %s5516_s29, %s4383_s4  ;;  %p4388_p4 = scmp.lt.u32.totalorder %s5516_s29, %s5754_s17 }
0x110d   : > { %p4389_p3 = scmp.lt.u32.totalorder %s4387_s7, %s4383_s4  ;;  %p4391_p0 = scmp.lt.u32.totalorder %s4383_s4, %s5516_s29 }
0x110e   : > { %p4385_p10 = pnand %p4384_p7, %p5755_p13 }
0x110f   : > { %p4390_p1 = por %p4389_p3, %p4388_p4 }
0x1110   : > { %p4386_p6 = pneg %p4385_p10 }
0x1111   : > { %p4392_p11 = por %p4391_p0, %p4390_p1 }
0x1113   : > { %p4393_p12 = pnand %p4392_p11, %p4386_p6 }
0x1115   : > { %4396 = shalt.err (!%p4393_p12)
}
0x1116   : > { %3878 = dma.vmem_to_hbm [thread:$0]  (%p5755_p13), %s5518_s10, 128, %s5516_s29, %s3084_s30  }
0x1117 PF: > { %s5756_s8 = sld [smem:[#allocation29_spill]]  ;;  %s5757_s14 = sld [smem:[#allocation22_spill]] }
0x1118   : > { %s5758_s13 = sld [smem:[#allocation38_spill]] }
0x111d   : > { %p3907_p8 = scmp.ge.s32.totalorder %s5756_s8, 2  ;;  %s3109_s20 = sand.u32 1, %s5757_s14  }
0x111e   : > { %p5759_p9 = scmp.ne.s32.totalorder %s5758_s13, 0  ;;  %s3110_s3 = scalar_lea.sflag [#allocation4], %s3109_s20 }
0x1120   : > { %p3903_p2 = pnand %p3907_p8, %p5759_p9 }
0x1122   : > { %4458 = dma.done.wait (!%p3903_p2), %s3110_s3, 128  }
0x1123   : > { %4460 = vsyncadd (!%p3903_p2), %s3110_s3, 4294967168  ;;  %s43_s2 = sadd.s32 1, %s5756_s8   ;;  %s5760_s27 = sld [smem:[#allocation20_spill]] }
0x1124   : > { %p40_p5 = scmp.ge.s32.totalorder %s43_s2, 6   ;;  %s5761_s28 = sld [smem:[#allocation21_spill]] }
0x1125   : > { %s5762_s29 = sld [smem:[#allocation35_spill]]  ;;  %s5763_s30 = sld [smem:[#allocation23_spill]] }
0x1126   : > { %s5764_s0 = sld [smem:[#allocation24_spill]]  ;;  %s5765_s19 = sld [smem:[#allocation36_spill]] }
0x1127   : > { %s5766_s1 = sld [smem:[#allocation27_spill]]  ;;  %s5767_s20 = sld [smem:[#allocation28_spill]] }
0x1128   : > { %s5768_s21 = sld [smem:[#allocation33_spill]]  ;;  %s5769_s22 = sld [smem:[#allocation34_spill]] }
0x1129   :  { %42 = sbr.rel (!%p40_p5) target bundleno = 35 (0x23), region = 246 }
0x1130   :  { %3115 = vsyncpa [#allocation3], 1 }
0x1131   :  { %3117 = vsyncpa [#allocation3 + $0x1], 1 }
0x1132   :  { %3118 = vsyncpa [#allocation6], 1 }
0x1133   :  { %3120 = vsyncpa [#allocation6 + $0x1], 1 }
0x1134   :  { %3121 = vsyncpa [#allocation9], 1 }
0x1135   :  { %3123 = vsyncpa [#allocation9 + $0x1], 1 }
0x1136   :  { %3124 = vsyncpa [#allocation12], 1 }
0x1137   :  { %3126 = vsyncpa [#allocation12 + $0x1], 1 }
0x1138   :  { %3127 = vsyncpa [#allocation4], 1 }
0x1139   :  { %3129 = vsyncpa [#allocation4 + $0x1], 1 }

</bundles_post_ra>
